<compile_context>
chip_gen: v5e
topology: v5e:2x2
jax: 0.10.0
libtpu: 0.0.40
codegen_flags: <defaults>
</compile_context>

<pallas_src>
import math

import jax
import jax.numpy as jnp
from jax.experimental import pallas as pl
from jax.experimental.pallas import tpu as pltpu


def make_ktrained_kernel(n, matmul_dtype=jnp.float32):
    """Builds the Pallas kernel body (transposed, batch-on-lanes layout)."""

    def kernel(x_ref,                      # [2N, TB]  x^T block
               w1f_ref, b1_ref, w1b_ref,   # W1 [H, 2N], b1 [H, 1], W1^T [2N, H]
               w2f_ref, b2_ref, w2b_ref,
               w3f_ref, b3_ref, w3b_ref,
               w4f_ref, b4_ref, w4b_ref,
               w5f_ref, b5_ref, w5b_ref,
               w6_ref,                     # W6^T column [H, 1] (b6 is dead for dK/dx)
               dq_ref, dp_ref):            # [N, TB] each
        def mm(a, b):
            return jnp.dot(a.astype(matmul_dtype), b.astype(matmul_dtype),
                           preferred_element_type=jnp.float32)

        def fwd(wf_ref, b_ref, h):
            # z = W @ h + b ; bias [H,1] broadcasts over lanes (batch).
            a = jax.nn.sigmoid(mm(wf_ref[...], h) + b_ref[...])
            return a, a - a * a            # activation, sigmoid'(z)

        x = x_ref[...]                                            # [2N, TB]
        _,  d1 = a1d1 = fwd(w1f_ref, b1_ref, x)
        a1 = a1d1[0]
        a2, d2 = fwd(w2f_ref, b2_ref, a1)
        a3, d3 = fwd(w3f_ref, b3_ref, a2)
        a4, d4 = fwd(w4f_ref, b4_ref, a3)
        _,  d5 = fwd(w5f_ref, b5_ref, a4)
        # K itself (w6 @ a5 + b6) is never needed for dK/dx -> not computed.

        # backward: d(sum K)/d a5^T is the w6 column broadcast over lanes;
        # fold it straight into the first sigmoid-derivative multiply.
        g = d5 * w6_ref[...]                                      # [H, TB]
        g = d4 * mm(w5b_ref[...], g)
        g = d3 * mm(w4b_ref[...], g)
        g = d2 * mm(w3b_ref[...], g)
        g = d1 * mm(w2b_ref[...], g)
        g = mm(w1b_ref[...], g)                                   # [2N, TB] = (dK/dx)^T

        # N is a multiple of 8 at the sizes used -> clean sublane-aligned split.
        dq_ref[...] = g[:n, :]
        dp_ref[...] = g[n:, :]

    return kernel


def init_params(key, n, hidden_dim):
    """Deterministic init matching the PyTorch module (torch weight layout).

    Weights W: [out, in], uniform(-sqrt(6/in), sqrt(6/in))   (explicit init loop)
    Biases  b: [out],     uniform(-1/sqrt(in), 1/sqrt(in))   (nn.Linear default)
    """
    dims = [2 * n, hidden_dim, hidden_dim, hidden_dim, hidden_dim, hidden_dim, 1]
    params = []
    keys = jax.random.split(key, 2 * (len(dims) - 1))
    for i in range(len(dims) - 1):
        fan_in, fan_out = dims[i], dims[i + 1]
        wk, bk = keys[2 * i], keys[2 * i + 1]
        w_bound = math.sqrt(6.0 / fan_in)
        b_bound = 1.0 / math.sqrt(fan_in)
        w = jax.random.uniform(wk, (fan_out, fan_in), jnp.float32, -w_bound, w_bound)
        b = jax.random.uniform(bk, (fan_out,), jnp.float32, -b_bound, b_bound)
        params.append((w, b))
    return params


def ktrained_forward(q, p, params, n, *, tb=128, matmul_dtype=jnp.float32):
    """q, p: [B, 1, N] -> (dq, dp) each [B, 1, N], matching KTrained.forward.

    tb: batch tile (lane) width; padded batch is tiled as grid=(ceil(B/tb),)
        with "parallel" semantics (use matmul_dtype=jnp.bfloat16 on v6e/v7x
        for extra MXU throughput at large batch).
    """
    b = q.shape[0]
    two_n = 2 * n

    # x^T: [2N, B] -- batch on lanes.
    xt = jnp.concatenate([q[:, 0, :], p[:, 0, :]], axis=1).T

    # Pad the batch (lane) dim up to a multiple of tb; padded lanes compute on
    # zeros (finite everywhere) and are sliced off afterwards.  Avoids the
    # remainder-dropping pitfall of grid = B // tb.
    bp = pl.cdiv(b, tb) * tb
    if bp != b:
        xt = jnp.pad(xt, ((0, 0), (0, bp - b)))

    # Flatten params: each hidden layer contributes (W [H,in], b [H,1], W^T [in,H]);
    # the final Linear(H,1) contributes only the w6 column (b6 is never used).
    flat = [xt]
    in_specs = [pl.BlockSpec((two_n, tb), lambda i: (0, i))]
    for w, bias in params[:5]:
        wt = w.T
        flat.extend([w, bias[:, None], wt])
        in_specs.extend([
            pl.BlockSpec(w.shape, lambda i: (0, 0)),
            pl.BlockSpec((w.shape[0], 1), lambda i: (0, 0)),
            pl.BlockSpec(wt.shape, lambda i: (0, 0)),
        ])
    w6_col = params[5][0].T                                   # [H, 1]
    flat.append(w6_col)
    in_specs.append(pl.BlockSpec(w6_col.shape, lambda i: (0, 0)))

    kernel = make_ktrained_kernel(n, matmul_dtype)
    dq_t, dp_t = pl.pallas_call(
        kernel,
        out_shape=(jax.ShapeDtypeStruct((n, bp), jnp.float32),
                   jax.ShapeDtypeStruct((n, bp), jnp.float32)),
        grid=(bp // tb,),
        in_specs=in_specs,
        out_specs=(pl.BlockSpec((n, tb), lambda i: (0, i)),
                   pl.BlockSpec((n, tb), lambda i: (0, i))),
        compiler_params=pltpu.CompilerParams(
            dimension_semantics=("parallel",)),
    )(*flat)

    dq = dq_t[:, :b].T.reshape(b, 1, n)
    dp = dp_t[:, :b].T.reshape(b, 1, n)
    return dq, dp


def ktrained_forward_ref(q, p, params, n):
    """Pure-JAX reference using autodiff (verification only)."""
    b = q.shape[0]
    x = jnp.concatenate([q[:, 0, :], p[:, 0, :]], axis=1)     # [B, 2N]

    def mlp_sum(xin):
        h = xin
        for i, (w, bias) in enumerate(params):
            h = h @ w.T + bias
            if i < len(params) - 1:
                h = jax.nn.sigmoid(h)
        return jnp.sum(h)

    dk = jax.grad(mlp_sum)(x).reshape(b, 1, 2 * n)
    return dk[:, :, :n], dk[:, :, n:2 * n]


if __name__ == "__main__":
    N = 16
    HIDDEN = 32
    B = 8

    key = jax.random.PRNGKey(0)
    kq, kp, kparam = jax.random.split(key, 3)
    q = jax.random.normal(kq, (B, 1, N), jnp.float32)
    p = jax.random.normal(kp, (B, 1, N), jnp.float32)
    params = init_params(kparam, N, HIDDEN)

    dq, dp = ktrained_forward(q, p, params, N)
    jax.block_until_ready((dq, dp))

    dq_ref, dp_ref = ktrained_forward_ref(q, p, params, N)
    assert jnp.allclose(dq, dq_ref, atol=1e-5, rtol=1e-4), "dq mismatch"
    assert jnp.allclose(dp, dp_ref, atol=1e-5, rtol=1e-4), "dp mismatch"

    print("KERNEL_OK")
</pallas_src>

<mosaic_0001>
module attributes {stable_mosaic.version = 11 : i64} {
  func.func @kernel(%arg0: i32, %arg1: memref<32x128xf32, #tpu.memory_space<vmem>>, %arg2: memref<32x32xf32, #tpu.memory_space<vmem>>, %arg3: memref<32x1xf32, #tpu.memory_space<vmem>>, %arg4: memref<32x32xf32, #tpu.memory_space<vmem>>, %arg5: memref<32x32xf32, #tpu.memory_space<vmem>>, %arg6: memref<32x1xf32, #tpu.memory_space<vmem>>, %arg7: memref<32x32xf32, #tpu.memory_space<vmem>>, %arg8: memref<32x32xf32, #tpu.memory_space<vmem>>, %arg9: memref<32x1xf32, #tpu.memory_space<vmem>>, %arg10: memref<32x32xf32, #tpu.memory_space<vmem>>, %arg11: memref<32x32xf32, #tpu.memory_space<vmem>>, %arg12: memref<32x1xf32, #tpu.memory_space<vmem>>, %arg13: memref<32x32xf32, #tpu.memory_space<vmem>>, %arg14: memref<32x32xf32, #tpu.memory_space<vmem>>, %arg15: memref<32x1xf32, #tpu.memory_space<vmem>>, %arg16: memref<32x32xf32, #tpu.memory_space<vmem>>, %arg17: memref<32x1xf32, #tpu.memory_space<vmem>>, %arg18: memref<16x128xf32, #tpu.memory_space<vmem>>, %arg19: memref<16x128xf32, #tpu.memory_space<vmem>>) attributes {dimension_semantics = [#tpu.dimension_semantics<parallel>], iteration_bounds = array<i64: 1>, scalar_prefetch = 0 : i64, scratch_operands = 0 : i64, tpu.core_type = #tpu.core_type<tc>, window_params = [{transform_indices = @transform_0, window_bounds = array<i64: 32, 128>}, {pipeline_mode = #tpu.pipeline_mode<synchronous>, transform_indices = @transform_1, window_bounds = array<i64: 32, 32>}, {pipeline_mode = #tpu.pipeline_mode<synchronous>, transform_indices = @transform_2, window_bounds = array<i64: 32, 1>}, {pipeline_mode = #tpu.pipeline_mode<synchronous>, transform_indices = @transform_3, window_bounds = array<i64: 32, 32>}, {pipeline_mode = #tpu.pipeline_mode<synchronous>, transform_indices = @transform_4, window_bounds = array<i64: 32, 32>}, {pipeline_mode = #tpu.pipeline_mode<synchronous>, transform_indices = @transform_5, window_bounds = array<i64: 32, 1>}, {pipeline_mode = #tpu.pipeline_mode<synchronous>, transform_indices = @transform_6, window_bounds = array<i64: 32, 32>}, {pipeline_mode = #tpu.pipeline_mode<synchronous>, transform_indices = @transform_7, window_bounds = array<i64: 32, 32>}, {pipeline_mode = #tpu.pipeline_mode<synchronous>, transform_indices = @transform_8, window_bounds = array<i64: 32, 1>}, {pipeline_mode = #tpu.pipeline_mode<synchronous>, transform_indices = @transform_9, window_bounds = array<i64: 32, 32>}, {pipeline_mode = #tpu.pipeline_mode<synchronous>, transform_indices = @transform_10, window_bounds = array<i64: 32, 32>}, {pipeline_mode = #tpu.pipeline_mode<synchronous>, transform_indices = @transform_11, window_bounds = array<i64: 32, 1>}, {pipeline_mode = #tpu.pipeline_mode<synchronous>, transform_indices = @transform_12, window_bounds = array<i64: 32, 32>}, {pipeline_mode = #tpu.pipeline_mode<synchronous>, transform_indices = @transform_13, window_bounds = array<i64: 32, 32>}, {pipeline_mode = #tpu.pipeline_mode<synchronous>, transform_indices = @transform_14, window_bounds = array<i64: 32, 1>}, {pipeline_mode = #tpu.pipeline_mode<synchronous>, transform_indices = @transform_15, window_bounds = array<i64: 32, 32>}, {pipeline_mode = #tpu.pipeline_mode<synchronous>, transform_indices = @transform_16, window_bounds = array<i64: 32, 1>}, {transform_indices = @transform_17, window_bounds = array<i64: 16, 128>}, {transform_indices = @transform_18, window_bounds = array<i64: 16, 128>}]} {
    %c0 = arith.constant 0 : index
    %c0_0 = arith.constant 0 : index
    %0 = vector.load %arg1[%c0, %c0_0] : memref<32x128xf32, #tpu.memory_space<vmem>>, vector<32x128xf32>
    %c0_1 = arith.constant 0 : index
    %c0_2 = arith.constant 0 : index
    %1 = vector.load %arg2[%c0_1, %c0_2] : memref<32x32xf32, #tpu.memory_space<vmem>>, vector<32x32xf32>
    %cst = arith.constant dense<0.000000e+00> : vector<32x128xf32>
    %2 = tpu.matmul %1, %0, %cst {dimension_numbers = #tpu.dot_dimension_numbers<[1], [0], [0], [1], [0, 0, 1, 1], [], []>} : vector<32x32xf32>, vector<32x128xf32>, vector<32x128xf32> -> vector<32x128xf32>
    %c0_3 = arith.constant 0 : index
    %c0_4 = arith.constant 0 : index
    %3 = vector.load %arg3[%c0_3, %c0_4] : memref<32x1xf32, #tpu.memory_space<vmem>>, vector<32x1xf32>
    %4 = vector.broadcast %3 : vector<32x1xf32> to vector<32x128xf32>
    %5 = arith.addf %2, %4 : vector<32x128xf32>
    %6 = arith.negf %5 : vector<32x128xf32>
    %7 = math.exp %6 : vector<32x128xf32>
    %cst_5 = arith.constant 1.000000e+00 : f32
    %8 = vector.broadcast %cst_5 : f32 to vector<32x128xf32>
    %9 = arith.addf %8, %7 : vector<32x128xf32>
    %10 = arith.divf %8, %9 : vector<32x128xf32>
    %11 = arith.mulf %10, %10 : vector<32x128xf32>
    %12 = arith.subf %10, %11 : vector<32x128xf32>
    %c0_6 = arith.constant 0 : index
    %c0_7 = arith.constant 0 : index
    %13 = vector.load %arg5[%c0_6, %c0_7] : memref<32x32xf32, #tpu.memory_space<vmem>>, vector<32x32xf32>
    %cst_8 = arith.constant dense<0.000000e+00> : vector<32x128xf32>
    %14 = tpu.matmul %13, %10, %cst_8 {dimension_numbers = #tpu.dot_dimension_numbers<[1], [0], [0], [1], [0, 0, 1, 1], [], []>} : vector<32x32xf32>, vector<32x128xf32>, vector<32x128xf32> -> vector<32x128xf32>
    %c0_9 = arith.constant 0 : index
    %c0_10 = arith.constant 0 : index
    %15 = vector.load %arg6[%c0_9, %c0_10] : memref<32x1xf32, #tpu.memory_space<vmem>>, vector<32x1xf32>
    %16 = vector.broadcast %15 : vector<32x1xf32> to vector<32x128xf32>
    %17 = arith.addf %14, %16 : vector<32x128xf32>
    %18 = arith.negf %17 : vector<32x128xf32>
    %19 = math.exp %18 : vector<32x128xf32>
    %cst_11 = arith.constant 1.000000e+00 : f32
    %20 = vector.broadcast %cst_11 : f32 to vector<32x128xf32>
    %21 = arith.addf %20, %19 : vector<32x128xf32>
    %22 = arith.divf %20, %21 : vector<32x128xf32>
    %23 = arith.mulf %22, %22 : vector<32x128xf32>
    %24 = arith.subf %22, %23 : vector<32x128xf32>
    %c0_12 = arith.constant 0 : index
    %c0_13 = arith.constant 0 : index
    %25 = vector.load %arg8[%c0_12, %c0_13] : memref<32x32xf32, #tpu.memory_space<vmem>>, vector<32x32xf32>
    %cst_14 = arith.constant dense<0.000000e+00> : vector<32x128xf32>
    %26 = tpu.matmul %25, %22, %cst_14 {dimension_numbers = #tpu.dot_dimension_numbers<[1], [0], [0], [1], [0, 0, 1, 1], [], []>} : vector<32x32xf32>, vector<32x128xf32>, vector<32x128xf32> -> vector<32x128xf32>
    %c0_15 = arith.constant 0 : index
    %c0_16 = arith.constant 0 : index
    %27 = vector.load %arg9[%c0_15, %c0_16] : memref<32x1xf32, #tpu.memory_space<vmem>>, vector<32x1xf32>
    %28 = vector.broadcast %27 : vector<32x1xf32> to vector<32x128xf32>
    %29 = arith.addf %26, %28 : vector<32x128xf32>
    %30 = arith.negf %29 : vector<32x128xf32>
    %31 = math.exp %30 : vector<32x128xf32>
    %cst_17 = arith.constant 1.000000e+00 : f32
    %32 = vector.broadcast %cst_17 : f32 to vector<32x128xf32>
    %33 = arith.addf %32, %31 : vector<32x128xf32>
    %34 = arith.divf %32, %33 : vector<32x128xf32>
    %35 = arith.mulf %34, %34 : vector<32x128xf32>
    %36 = arith.subf %34, %35 : vector<32x128xf32>
    %c0_18 = arith.constant 0 : index
    %c0_19 = arith.constant 0 : index
    %37 = vector.load %arg11[%c0_18, %c0_19] : memref<32x32xf32, #tpu.memory_space<vmem>>, vector<32x32xf32>
    %cst_20 = arith.constant dense<0.000000e+00> : vector<32x128xf32>
    %38 = tpu.matmul %37, %34, %cst_20 {dimension_numbers = #tpu.dot_dimension_numbers<[1], [0], [0], [1], [0, 0, 1, 1], [], []>} : vector<32x32xf32>, vector<32x128xf32>, vector<32x128xf32> -> vector<32x128xf32>
    %c0_21 = arith.constant 0 : index
    %c0_22 = arith.constant 0 : index
    %39 = vector.load %arg12[%c0_21, %c0_22] : memref<32x1xf32, #tpu.memory_space<vmem>>, vector<32x1xf32>
    %40 = vector.broadcast %39 : vector<32x1xf32> to vector<32x128xf32>
    %41 = arith.addf %38, %40 : vector<32x128xf32>
    %42 = arith.negf %41 : vector<32x128xf32>
    %43 = math.exp %42 : vector<32x128xf32>
    %cst_23 = arith.constant 1.000000e+00 : f32
    %44 = vector.broadcast %cst_23 : f32 to vector<32x128xf32>
    %45 = arith.addf %44, %43 : vector<32x128xf32>
    %46 = arith.divf %44, %45 : vector<32x128xf32>
    %47 = arith.mulf %46, %46 : vector<32x128xf32>
    %48 = arith.subf %46, %47 : vector<32x128xf32>
    %c0_24 = arith.constant 0 : index
    %c0_25 = arith.constant 0 : index
    %49 = vector.load %arg14[%c0_24, %c0_25] : memref<32x32xf32, #tpu.memory_space<vmem>>, vector<32x32xf32>
    %cst_26 = arith.constant dense<0.000000e+00> : vector<32x128xf32>
    %50 = tpu.matmul %49, %46, %cst_26 {dimension_numbers = #tpu.dot_dimension_numbers<[1], [0], [0], [1], [0, 0, 1, 1], [], []>} : vector<32x32xf32>, vector<32x128xf32>, vector<32x128xf32> -> vector<32x128xf32>
    %c0_27 = arith.constant 0 : index
    %c0_28 = arith.constant 0 : index
    %51 = vector.load %arg15[%c0_27, %c0_28] : memref<32x1xf32, #tpu.memory_space<vmem>>, vector<32x1xf32>
    %52 = vector.broadcast %51 : vector<32x1xf32> to vector<32x128xf32>
    %53 = arith.addf %50, %52 : vector<32x128xf32>
    %54 = arith.negf %53 : vector<32x128xf32>
    %55 = math.exp %54 : vector<32x128xf32>
    %cst_29 = arith.constant 1.000000e+00 : f32
    %56 = vector.broadcast %cst_29 : f32 to vector<32x128xf32>
    %57 = arith.addf %56, %55 : vector<32x128xf32>
    %58 = arith.divf %56, %57 : vector<32x128xf32>
    %59 = arith.mulf %58, %58 : vector<32x128xf32>
    %60 = arith.subf %58, %59 : vector<32x128xf32>
    %c0_30 = arith.constant 0 : index
    %c0_31 = arith.constant 0 : index
    %61 = vector.load %arg17[%c0_30, %c0_31] : memref<32x1xf32, #tpu.memory_space<vmem>>, vector<32x1xf32>
    %62 = vector.broadcast %61 : vector<32x1xf32> to vector<32x128xf32>
    %63 = arith.mulf %60, %62 : vector<32x128xf32>
    %c0_32 = arith.constant 0 : index
    %c0_33 = arith.constant 0 : index
    %64 = vector.load %arg16[%c0_32, %c0_33] : memref<32x32xf32, #tpu.memory_space<vmem>>, vector<32x32xf32>
    %cst_34 = arith.constant dense<0.000000e+00> : vector<32x128xf32>
    %65 = tpu.matmul %64, %63, %cst_34 {dimension_numbers = #tpu.dot_dimension_numbers<[1], [0], [0], [1], [0, 0, 1, 1], [], []>} : vector<32x32xf32>, vector<32x128xf32>, vector<32x128xf32> -> vector<32x128xf32>
    %66 = arith.mulf %48, %65 : vector<32x128xf32>
    %c0_35 = arith.constant 0 : index
    %c0_36 = arith.constant 0 : index
    %67 = vector.load %arg13[%c0_35, %c0_36] : memref<32x32xf32, #tpu.memory_space<vmem>>, vector<32x32xf32>
    %cst_37 = arith.constant dense<0.000000e+00> : vector<32x128xf32>
    %68 = tpu.matmul %67, %66, %cst_37 {dimension_numbers = #tpu.dot_dimension_numbers<[1], [0], [0], [1], [0, 0, 1, 1], [], []>} : vector<32x32xf32>, vector<32x128xf32>, vector<32x128xf32> -> vector<32x128xf32>
    %69 = arith.mulf %36, %68 : vector<32x128xf32>
    %c0_38 = arith.constant 0 : index
    %c0_39 = arith.constant 0 : index
    %70 = vector.load %arg10[%c0_38, %c0_39] : memref<32x32xf32, #tpu.memory_space<vmem>>, vector<32x32xf32>
    %cst_40 = arith.constant dense<0.000000e+00> : vector<32x128xf32>
    %71 = tpu.matmul %70, %69, %cst_40 {dimension_numbers = #tpu.dot_dimension_numbers<[1], [0], [0], [1], [0, 0, 1, 1], [], []>} : vector<32x32xf32>, vector<32x128xf32>, vector<32x128xf32> -> vector<32x128xf32>
    %72 = arith.mulf %24, %71 : vector<32x128xf32>
    %c0_41 = arith.constant 0 : index
    %c0_42 = arith.constant 0 : index
    %73 = vector.load %arg7[%c0_41, %c0_42] : memref<32x32xf32, #tpu.memory_space<vmem>>, vector<32x32xf32>
    %cst_43 = arith.constant dense<0.000000e+00> : vector<32x128xf32>
    %74 = tpu.matmul %73, %72, %cst_43 {dimension_numbers = #tpu.dot_dimension_numbers<[1], [0], [0], [1], [0, 0, 1, 1], [], []>} : vector<32x32xf32>, vector<32x128xf32>, vector<32x128xf32> -> vector<32x128xf32>
    %75 = arith.mulf %12, %74 : vector<32x128xf32>
    %c0_44 = arith.constant 0 : index
    %c0_45 = arith.constant 0 : index
    %76 = vector.load %arg4[%c0_44, %c0_45] : memref<32x32xf32, #tpu.memory_space<vmem>>, vector<32x32xf32>
    %cst_46 = arith.constant dense<0.000000e+00> : vector<32x128xf32>
    %77 = tpu.matmul %76, %75, %cst_46 {dimension_numbers = #tpu.dot_dimension_numbers<[1], [0], [0], [1], [0, 0, 1, 1], [], []>} : vector<32x32xf32>, vector<32x128xf32>, vector<32x128xf32> -> vector<32x128xf32>
    %78 = vector.extract_strided_slice %77 {offsets = [0, 0], sizes = [16, 128], strides = [1, 1]} : vector<32x128xf32> to vector<16x128xf32>
    %c0_47 = arith.constant 0 : index
    %c0_48 = arith.constant 0 : index
    %79 = vector.load %arg18[%c0_47, %c0_48] : memref<16x128xf32, #tpu.memory_space<vmem>>, vector<16x128xf32>
    tpu.vector_store %arg18[%c0_47, %c0_48], %78 {strides = array<i32>} : memref<16x128xf32, #tpu.memory_space<vmem>>, vector<16x128xf32>,
    %80 = vector.extract_strided_slice %77 {offsets = [16, 0], sizes = [16, 128], strides = [1, 1]} : vector<32x128xf32> to vector<16x128xf32>
    %c0_49 = arith.constant 0 : index
    %c0_50 = arith.constant 0 : index
    %81 = vector.load %arg19[%c0_49, %c0_50] : memref<16x128xf32, #tpu.memory_space<vmem>>, vector<16x128xf32>
    tpu.vector_store %arg19[%c0_49, %c0_50], %80 {strides = array<i32>} : memref<16x128xf32, #tpu.memory_space<vmem>>, vector<16x128xf32>,
    return
  }
  func.func @transform_0(%arg0: i32) -> (i32, i32) {
    %c0_i32 = arith.constant 0 : i32
    %c0_i32_0 = arith.constant 0 : i32
    return %c0_i32, %arg0 : i32, i32
  }
  func.func @transform_1(%arg0: i32) -> (i32, i32) {
    %c0_i32 = arith.constant 0 : i32
    %c0_i32_0 = arith.constant 0 : i32
    %c0_i32_1 = arith.constant 0 : i32
    return %c0_i32, %c0_i32_0 : i32, i32
  }
  func.func @transform_2(%arg0: i32) -> (i32, i32) {
    %c0_i32 = arith.constant 0 : i32
    %c0_i32_0 = arith.constant 0 : i32
    %c0_i32_1 = arith.constant 0 : i32
    return %c0_i32, %c0_i32_0 : i32, i32
  }
  func.func @transform_3(%arg0: i32) -> (i32, i32) {
    %c0_i32 = arith.constant 0 : i32
    %c0_i32_0 = arith.constant 0 : i32
    %c0_i32_1 = arith.constant 0 : i32
    return %c0_i32, %c0_i32_0 : i32, i32
  }
  func.func @transform_4(%arg0: i32) -> (i32, i32) {
    %c0_i32 = arith.constant 0 : i32
    %c0_i32_0 = arith.constant 0 : i32
    %c0_i32_1 = arith.constant 0 : i32
    return %c0_i32, %c0_i32_0 : i32, i32
  }
  func.func @transform_5(%arg0: i32) -> (i32, i32) {
    %c0_i32 = arith.constant 0 : i32
    %c0_i32_0 = arith.constant 0 : i32
    %c0_i32_1 = arith.constant 0 : i32
    return %c0_i32, %c0_i32_0 : i32, i32
  }
  func.func @transform_6(%arg0: i32) -> (i32, i32) {
    %c0_i32 = arith.constant 0 : i32
    %c0_i32_0 = arith.constant 0 : i32
    %c0_i32_1 = arith.constant 0 : i32
    return %c0_i32, %c0_i32_0 : i32, i32
  }
  func.func @transform_7(%arg0: i32) -> (i32, i32) {
    %c0_i32 = arith.constant 0 : i32
    %c0_i32_0 = arith.constant 0 : i32
    %c0_i32_1 = arith.constant 0 : i32
    return %c0_i32, %c0_i32_0 : i32, i32
  }
  func.func @transform_8(%arg0: i32) -> (i32, i32) {
    %c0_i32 = arith.constant 0 : i32
    %c0_i32_0 = arith.constant 0 : i32
    %c0_i32_1 = arith.constant 0 : i32
    return %c0_i32, %c0_i32_0 : i32, i32
  }
  func.func @transform_9(%arg0: i32) -> (i32, i32) {
    %c0_i32 = arith.constant 0 : i32
    %c0_i32_0 = arith.constant 0 : i32
    %c0_i32_1 = arith.constant 0 : i32
    return %c0_i32, %c0_i32_0 : i32, i32
  }
  func.func @transform_10(%arg0: i32) -> (i32, i32) {
    %c0_i32 = arith.constant 0 : i32
    %c0_i32_0 = arith.constant 0 : i32
    %c0_i32_1 = arith.constant 0 : i32
    return %c0_i32, %c0_i32_0 : i32, i32
  }
  func.func @transform_11(%arg0: i32) -> (i32, i32) {
    %c0_i32 = arith.constant 0 : i32
    %c0_i32_0 = arith.constant 0 : i32
    %c0_i32_1 = arith.constant 0 : i32
    return %c0_i32, %c0_i32_0 : i32, i32
  }
  func.func @transform_12(%arg0: i32) -> (i32, i32) {
    %c0_i32 = arith.constant 0 : i32
    %c0_i32_0 = arith.constant 0 : i32
    %c0_i32_1 = arith.constant 0 : i32
    return %c0_i32, %c0_i32_0 : i32, i32
  }
  func.func @transform_13(%arg0: i32) -> (i32, i32) {
    %c0_i32 = arith.constant 0 : i32
    %c0_i32_0 = arith.constant 0 : i32
    %c0_i32_1 = arith.constant 0 : i32
    return %c0_i32, %c0_i32_0 : i32, i32
  }
  func.func @transform_14(%arg0: i32) -> (i32, i32) {
    %c0_i32 = arith.constant 0 : i32
    %c0_i32_0 = arith.constant 0 : i32
    %c0_i32_1 = arith.constant 0 : i32
    return %c0_i32, %c0_i32_0 : i32, i32
  }
  func.func @transform_15(%arg0: i32) -> (i32, i32) {
    %c0_i32 = arith.constant 0 : i32
    %c0_i32_0 = arith.constant 0 : i32
    %c0_i32_1 = arith.constant 0 : i32
    return %c0_i32, %c0_i32_0 : i32, i32
  }
  func.func @transform_16(%arg0: i32) -> (i32, i32) {
    %c0_i32 = arith.constant 0 : i32
    %c0_i32_0 = arith.constant 0 : i32
    %c0_i32_1 = arith.constant 0 : i32
    return %c0_i32, %c0_i32_0 : i32, i32
  }
  func.func @transform_17(%arg0: i32) -> (i32, i32) {
    %c0_i32 = arith.constant 0 : i32
    %c0_i32_0 = arith.constant 0 : i32
    return %c0_i32, %arg0 : i32, i32
  }
  func.func @transform_18(%arg0: i32) -> (i32, i32) {
    %c0_i32 = arith.constant 0 : i32
    %c0_i32_0 = arith.constant 0 : i32
    return %c0_i32, %arg0 : i32, i32
  }
}

</mosaic_0001>

<bundles_post_ra>
// kernel: tpu_custom_call.1
= control target key start
LH: loop header
LB: loop body
LE: loop exit
PB: predicated region body
PF: predicated region fallthrough
CT: control target
= control target key end

     0   :  { %s2122_s0 = inlined_call_operand.vmem [shape: f32[32,128], index: 0, kind: input, shape index: {}]   ;;  %s2123_s1 = inlined_call_operand.vmem [shape: f32[32,32], index: 1, kind: input, shape index: {}]   ;;  %s2124_s2 = inlined_call_operand.vmem [shape: f32[32,1], index: 2, kind: input, shape index: {}]   ;;  %s2125_s3 = inlined_call_operand.vmem [shape: f32[32,32], index: 3, kind: input, shape index: {}]   ;;  %s2126_s4 = inlined_call_operand.vmem [shape: f32[32,32], index: 4, kind: input, shape index: {}]   ;;  %s2127_s5 = inlined_call_operand.vmem [shape: f32[32,1], index: 5, kind: input, shape index: {}]   ;;  %s2128_s6 = inlined_call_operand.vmem [shape: f32[32,32], index: 6, kind: input, shape index: {}]   ;;  %s2129_s7 = inlined_call_operand.vmem [shape: f32[32,32], index: 7, kind: input, shape index: {}]   ;;  %s2130_s8 = inlined_call_operand.vmem [shape: f32[32,1], index: 8, kind: input, shape index: {}]   ;;  %s2131_s9 = inlined_call_operand.hbm [shape: f32[32,32], index: 9, kind: input, shape index: {}]   ;;  %s2132_s10 = inlined_call_operand.hbm [shape: f32[32,32], index: 10, kind: input, shape index: {}]   ;;  %s2133_s11 = inlined_call_operand.vmem [shape: f32[32,1], index: 11, kind: input, shape index: {}]   ;;  %s2134_s12 = inlined_call_operand.hbm [shape: f32[32,32], index: 12, kind: input, shape index: {}]   ;;  %s2135_s13 = inlined_call_operand.hbm [shape: f32[32,32], index: 13, kind: input, shape index: {}]   ;;  %s2136_s14 = inlined_call_operand.vmem [shape: f32[32,1], index: 14, kind: input, shape index: {}]   ;;  %s2137_s15 = inlined_call_operand.hbm [shape: f32[32,32], index: 15, kind: input, shape index: {}]   ;;  %s2138_s16 = inlined_call_operand.vmem [shape: f32[32,1], index: 16, kind: input, shape index: {}]   ;;  %s2139_s17 = inlined_call_operand.hbm [shape: f32[16,128], index: 17, kind: output, shape index: {0}]   ;;  %s2140_s18 = inlined_call_operand.hbm [shape: f32[16,128], index: 18, kind: output, shape index: {1}]  }
   0x1   :  { %2144 = sst [smem:[#allocation19_spill]] %s2122_s0 }
   0x2   :  { %2145 = sst [smem:[#allocation20_spill]] %s2123_s1 }
   0x3   :  { %2146 = sst [smem:[#allocation21_spill]] %s2124_s2 }
   0x4   :  { %24 = vsyncpa [#allocation3], 0 }
   0x5   :  { %25 = vsyncpa [#allocation6], 0 }
   0x6   :  { %26 = vsyncpa [#allocation9], 0 }
   0x7   :  { %27 = vsyncpa [#allocation4], 0 }
   0x8   :  { %28 = vsyncpa [#allocation13], 0  ;;  %s64_s29 = sshll.u32 %s2132_s10, 4  ;;  %s1559_s30 = smov [#allocation5]   ;;  %s65_s29 = int_to_ptr.hbm [resolvable:$true] %s64_s29 }
   0x9   :  { %s66_s0 = sshll.u32 %s1559_s30, 4  ;;  %s92_s20 = sshll.u32 %s2135_s13, 4  ;;  %s67_s0 = int_to_ptr.vmem [resolvable:$true] %s66_s0  ;;  %s93_s20 = int_to_ptr.hbm [resolvable:$true] %s92_s20 }
   0xa   :  { %s1560_s21 = smov 128   ;;  %s1561_s22 = smov 8  }
   0xb   :  { %72 = dma.hbm_to_vmem [thread:$0]  %s65_s29, 512, %s67_s0, [#allocation6], %s1560_s21, %s1560_s21, %s1561_s22  }
   0xc   :  { %s1562_s2 = smov [#allocation8]   ;;  %s51_s10 = sshll.u32 %s2131_s9, 4  ;;  %s52_s10 = int_to_ptr.hbm [resolvable:$true] %s51_s10 }
   0xd   :  { %s94_s23 = sshll.u32 %s1562_s2, 4  ;;  %s79_s27 = sshll.u32 %s2134_s12, 4  ;;  %s95_s23 = int_to_ptr.vmem [resolvable:$true] %s94_s23  ;;  %s80_s27 = int_to_ptr.hbm [resolvable:$true] %s79_s27 }
   0xe   :  { %100 = dma.hbm_to_vmem [thread:$0]  %s93_s20, 512, %s95_s23, [#allocation9], %s1560_s21, %s1560_s21, %s1561_s22  }
   0xf   :  { %s1563_s28 = smov [#allocation2]   ;;  %s1564_s29 = smov [#allocation7]  }
  0x10   :  { %s53_s30 = sshll.u32 %s1563_s28, 4  ;;  %s81_s9 = sshll.u32 %s1564_s29, 4  ;;  %s54_s30 = int_to_ptr.vmem [resolvable:$true] %s53_s30  ;;  %s82_s9 = int_to_ptr.vmem [resolvable:$true] %s81_s9 }
  0x11   :  { %59 = dma.hbm_to_vmem [thread:$0]  %s52_s10, 512, %s54_s30, [#allocation3], %s1560_s21, %s1560_s21, %s1561_s22  }
  0x12   :  { %s107_s1 = sshll.u32 %s2137_s15, 4  ;;  %s1565_s12 = smov [#allocation10]   ;;  %s108_s1 = int_to_ptr.hbm [resolvable:$true] %s107_s1 }
  0x13   :  { %87 = dma.hbm_to_vmem [thread:$0]  %s80_s27, 512, %s82_s9, [#allocation6], %s1560_s21, %s1560_s21, %s1561_s22  }
  0x14   :  { %s109_s20 = sshll.u32 %s1565_s12, 4  ;;  %s110_s20 = int_to_ptr.vmem [resolvable:$true] %s109_s20 }
  0x15   :  { %115 = dma.hbm_to_vmem [thread:$0]  %s108_s1, 512, %s110_s20, [#allocation9], %s1560_s21, %s1560_s21, %s1561_s22  }
  0x16   :  { %1549 = dma.done.wait [#allocation3], 512  }
  0x17   :  { %1550 = vsyncadd [#allocation3], 4294966784 }
  0x18   :  { %1551 = dma.done.wait [#allocation6], 1024  }
  0x19   :  { %1552 = vsyncadd [#allocation6], 4294966272 }
  0x1a   :  { %1553 = dma.done.wait [#allocation9], 1024  }
  0x1b   :  { %1554 = vsyncadd [#allocation9], 4294966272  ;;  %v1566_v0 = vmov 0   ;;  %s2147_s23 = sld [smem:[#allocation21_spill]]  ;;  %vm170_vm0 = vcmask 261120   ;;  %v301_v13 = vld [vmem:[%s2127_s5 + $0x8] sm:$0xff] }
  0x1c   :  { %1299 = vset.pattern.permute.xlu1 %v1566_v0  ;;  %1298 = vset.pattern.permute.xlu0 %v1566_v0  ;;  %s2148_s26 = sld [smem:[#allocation19_spill]]  ;;  %v300_v14 = vld [vmem:[%s2127_s5] sm:$0xff]  ;;  %v455_v15 = vld [vmem:[%s2130_s8 + $0x10] sm:$0xff]  ;;  %v454_v16 = vld [vmem:[%s2130_s8 + $0x8] sm:$0xff]  ;;  %s1567_s1 = smov [#allocation11]  }
  0x1d   :  { %1300 = vset.pattern.permute.xlu2 %v1566_v0  ;;  %s2149_s12 = sld [smem:[#allocation20_spill]]  ;;  %v609_v17 = vld [vmem:[%s2133_s11 + $0x18] sm:$0xff]  ;;  %v608_v18 = vld [vmem:[%s2133_s11 + $0x10] sm:$0xff]  ;;  %v606_v19 = vld [vmem:[%s2133_s11] sm:$0xff]  ;;  %s1187_s20 = sshll.u32 %s2139_s17, 4  ;;  %s1188_s20 = int_to_ptr.hbm [resolvable:$true] %s1187_s20 }
  0x1e   :  { %v762_v20 = vld [vmem:[%s2136_s14 + $0x18] sm:$0xff]  ;;  %v760_v21 = vld [vmem:[%s2136_s14 + $0x8] sm:$0xff]  ;;  %v759_v22 = vld [vmem:[%s2136_s14] sm:$0xff] }
  0x1f   :  { %v910_v23 = vld [vmem:[%s2138_s16 + $0x10] sm:$0xff]  ;;  %v909_v24 = vld [vmem:[%s2138_s16 + $0x8] sm:$0xff]  ;;  %v303_v31 = vld [vmem:[%s2127_s5 + $0x18] sm:$0xff] }
  0x20   :  { %321 = vperm.xlu2 %1300, %v303_v31   ;;  %v302_v40 = vld [vmem:[%s2127_s5 + $0x10] sm:$0xff]  ;;  %v456_v49 = vld [vmem:[%s2130_s8 + $0x18] sm:$0xff]  ;;  %v453_v56 = vld [vmem:[%s2130_s8] sm:$0xff]  ;;  %s1200_s5 = sshll.u32 %s2140_s18, 4  ;;  %s1201_s5 = int_to_ptr.hbm [resolvable:$true] %s1200_s5 }
  0x21   :  { %v149_v1 = vld [vmem:[%s2147_s23 + $0x18] sm:$0xff]  ;;  %v147_v2 = vld [vmem:[%s2147_s23 + $0x8] sm:$0xff]  ;;  %v148_v9 = vld [vmem:[%s2147_s23 + $0x10] sm:$0xff] }
  0x22   :  { %v141_v3 = vld [vmem:[%s2148_s26 + $0x18] sm:$0xff]  ;;  %167 = vperm.xlu0 %1298, %v149_v1   ;;  %157 = vperm.xlu1 %1299, %v147_v2   ;;  %v140_v4 = vld [vmem:[%s2148_s26 + $0x10] sm:$0xff]  ;;  %v139_v5 = vld [vmem:[%s2148_s26 + $0x8] sm:$0xff] }
  0x23   :  { %195 = vmatpush.msra.mxu0 %v141_v3  ;;  %1280 = vmatpush.msra.mxu2 %v141_v3  ;;  %v138_v6 = vld [vmem:[%s2148_s26] sm:$0xff]  ;;  %v144_v8 = vld [vmem:[%s2149_s12 + $0x10] sm:$0xff]  ;;  %v143_v11 = vld [vmem:[%s2149_s12 + $0x8] sm:$0xff] }
  0x24   :  { %v142_v7 = vld [vmem:[%s2149_s12] sm:$0xff]  ;;  %v145_v12 = vld [vmem:[%s2149_s12 + $0x18] sm:$0xff]  ;;  %v607_v1 = vld [vmem:[%s2133_s11 + $0x8] sm:$0xff]  ;;  %s1185_s12 = sshll.u32 %s1567_s1, 4  ;;  %s1186_s12 = int_to_ptr.vmem [resolvable:$true] %s1185_s12 }
  0x25   :  { %196 = vmatpush.msra.mxu0 %v140_v4  ;;  %1281 = vmatpush.msra.mxu2 %v140_v4  ;;  %v146_v10 = vld [vmem:[%s2147_s23] sm:$0xff] }
  0x27   :  { %197 = vmatpush.msra.mxu0 %v139_v5  ;;  %1282 = vmatpush.msra.mxu2 %v139_v5 }
  0x28   :  { %316 = vperm.xlu2 %1300, %v302_v40  }
  0x29   :  { %198 = vmatpush.msra.mxu0 %v138_v6  ;;  %1283 = vmatpush.msra.mxu2 %v138_v6 }
  0x2a   :  { %1220 = vmatmul.msk.f32.vlgmr.msra.gmra.mxu0 %vm170_vm0, %v142_v7  ;;  %1222 = vmatmul.msk.f32.vlgmr.msra.gmra.mxu2 %vm170_vm0, %v144_v8 }
  0x2b   :  { %162 = vperm.xlu0 %1298, %v148_v9   ;;  %152 = vperm.xlu1 %1299, %v146_v10  }
  0x30   :  { %474 = vperm.xlu2 %1300, %v456_v49  }
  0x32   :  { %1221 = vmatmul.msk.f32.gmra.mxu0 %vm170_vm0, %v143_v11  ;;  %1223 = vmatmul.msk.f32.gmra.mxu2 %vm170_vm0, %v145_v12 }
  0x33   :  { %311 = vperm.xlu0 %1298, %v301_v13   ;;  %306 = vperm.xlu1 %1299, %v300_v14  }
  0x38   :  { %459 = vperm.xlu2 %1300, %v453_v56  }
  0x3b   :  { %469 = vperm.xlu0 %1298, %v455_v15   ;;  %464 = vperm.xlu1 %1299, %v454_v16  }
  0x40   :  { %617 = vperm.xlu2 %1300, %v607_v1  }
  0x43   :  { %627 = vperm.xlu0 %1298, %v609_v17   ;;  %622 = vperm.xlu1 %1299, %v608_v18  }
  0x4b   :  { %612 = vperm.xlu0 %1298, %v606_v19   ;;  %780 = vperm.xlu1 %1299, %v762_v20   ;;  %v761_v20 = vld [vmem:[%s2136_s14 + $0x10] sm:$0xff] }
  0x4c   :  { %775 = vperm.xlu2 %1300, %v761_v20  }
  0x53   :  { %770 = vperm.xlu0 %1298, %v760_v21   ;;  %765 = vperm.xlu1 %1299, %v759_v22  }
  0x5b   :  { %924 = vperm.xlu0 %1298, %v910_v23   ;;  %919 = vperm.xlu1 %1299, %v909_v24  }
  0x94   :  { %v158_v25 = vpop.permute.xlu1 %157  ;;  %v168_v26 = vpop.permute.xlu0 %167 }
  0x9d   :  { %v153_v27 = vpop.permute.xlu1 %152  ;;  %v163_v32 = vpop.permute.xlu0 %162 }
  0xa5   :  { %v307_v40 = vpop.permute.xlu1 %306 }
  0xa7   :  { %v200_v28 = vpop.f32.mrf.mxu0 }
  0xa8   :  { %v201_v29 = vadd.f32 %v200_v28, %v153_v27 }
  0xaa   :  { %v1224_v30 = vmul.f32 -1.442695, %v201_v29 }
  0xac   :  { %1301 = vpow2.f32 %v1224_v30 }
  0xad   :  { %v206_v33 = vpop.f32.mrf.mxu2 }
  0xae   :  { %v207_v34 = vadd.f32 %v206_v33, %v163_v32  ;;  %v296_v32 = vld [vmem:[%s2126_s4] sm:$0xff]  ;;  %v298_v33 = vld [vmem:[%s2126_s4 + $0x10] sm:$0xff] }
  0xaf   :  { %v203_v35 = vpop.f32.mrf.mxu0 }
  0xb0   :  { %v204_v36 = vadd.f32 %v203_v35, %v158_v25  ;;  %v1226_v37 = vmul.f32 -1.442695, %v207_v34  ;;  %v911_v35 = vld [vmem:[%s2138_s16 + $0x18] sm:$0xff] }
  0xb1   :  { %929 = vperm.xlu2 %1300, %v911_v35  }
  0xb2   :  { %v1225_v38 = vmul.f32 -1.442695, %v204_v36  ;;  %v1302_v39 = vpop.eup %1301  ;;  %1303 = vpow2.f32 %v1226_v37  ;;  %v297_v36 = vld [vmem:[%s2126_s4 + $0x8] sm:$0xff]  ;;  %v299_v37 = vld [vmem:[%s2126_s4 + $0x18] sm:$0xff] }
  0xb3   :  { %v1776_v41 = vadd.f32 1.0, %v1302_v39  ;;  %v322_v39 = vpop.permute.xlu2 %321 }
  0xb4   :  { %1305 = vpow2.f32 %v1225_v38  ;;  %v908_v38 = vld [vmem:[%s2138_s16] sm:$0xff] }
  0xb5   :  { %v209_v42 = vpop.f32.mrf.mxu2  ;;  %1307 = vrcp.f32 %v1776_v41  ;;  %vm233_vm2 = vweird.f32 %v1776_v41  ;;  %v239_v24 = vand.u32 2147483648, %v1776_v41 }
  0xb6   :  { %v210_v43 = vadd.f32 %v209_v42, %v168_v26  ;;  %v237_v26 = vand.u32 2147483647, %v1776_v41 }
  0xb7   :  { %v240_v31 = vor.u32 1.1754944e-38, %v239_v24 }
  0xb8   :  { %v1304_v44 = vpop.eup %1303  ;;  %v1227_v45 = vmul.f32 -1.442695, %v210_v43 }
  0xb9   :  { %v226_v47 = vadd.f32 1.0, %v1304_v44  ;;  %914 = vperm.xlu2 %1300, %v908_v38  }
  0xba   :  { %v1306_v46 = vpop.eup %1305  ;;  %1309 = vpow2.f32 %v1227_v45 }
  0xbb   :  { %v1779_v48 = vadd.f32 1.0, %v1306_v46  ;;  %1311 = vrcp.f32 %v226_v47  ;;  %v1785_v50 = vpop.eup %1307  ;;  %vm263_vm4 = vweird.f32 %v226_v47  ;;  %v267_v9 = vand.u32 2147483647, %v226_v47  ;;  %v317_v44 = vpop.permute.xlu2 %316 }
  0xbc   :  { %v229_v58 = vmul.f32 %v1785_v50, %v1776_v41  ;;  %v269_v10 = vand.u32 2147483648, %v226_v47  ;;  %vm234_vm10 = vweird.f32 %v1785_v50 }
  0xbd   :  { %1313 = vrcp.f32 %v1779_v48  ;;  %vm248_vm5 = vweird.f32 %v1779_v48  ;;  %v252_v15 = vand.u32 2147483647, %v1779_v48  ;;  %v254_v16 = vand.u32 2147483648, %v1779_v48  ;;  %vm235_vm14 = vmor %vm233_vm2, %vm234_vm10 }
  0xbe   :  { %v230_v62 = vsub.f32 1.0, %v229_v58  ;;  %v270_v22 = vor.u32 1.1754944e-38, %v269_v10  ;;  %vm268_vm13 = vcmp.eq.f32.partialorder %v267_v9, 8.507059e+37 }
  0xbf   :  { %v255_v28 = vor.u32 1.1754944e-38, %v254_v16  ;;  %vm253_vm15 = vcmp.eq.f32.partialorder %v252_v15, 8.507059e+37 }
  0xc0   :  { %v1310_v51 = vpop.eup %1309  ;;  %v231_v5 = vmul.f32 %v1785_v50, %v230_v62 }
  0xc1   :  { %v1312_v52 = vpop.eup %1311  ;;  %v227_v53 = vadd.f32 1.0, %v1310_v51 }
  0xc2   :  { %v259_v55 = vmul.f32 %v1312_v52, %v226_v47  ;;  %vm264_vm1 = vweird.f32 %v1312_v52  ;;  %v232_v19 = vadd.f32 %v1785_v50, %v231_v5  ;;  %v312_v47 = vpop.permute.xlu0 %311 }
  0xc3   :  { %v1787_v54 = vpop.eup %1313  ;;  %1315 = vrcp.f32 %v227_v53  ;;  %v284_v4 = vand.u32 2147483648, %v227_v53  ;;  %v282_v7 = vand.u32 2147483647, %v227_v53  ;;  %vm278_vm6 = vweird.f32 %v227_v53  ;;  %vm1803_vm7 = vmor %vm263_vm4, %vm264_vm1 }
  0xc4   :  { %v244_v57 = vmul.f32 %v1787_v54, %v1779_v48  ;;  %v260_v59 = vsub.f32 1.0, %v259_v55  ;;  %vm249_vm8 = vweird.f32 %v1787_v54  ;;  %v236_v29 = vsel %vm235_vm14, %v1785_v50, %v232_v19 }
  0xc5   :  { %v285_v14 = vor.u32 1.1754944e-38, %v284_v4  ;;  %vm283_vm11 = vcmp.eq.f32.partialorder %v282_v7, 8.507059e+37  ;;  %vm1822_vm12 = vmor %vm248_vm5, %vm249_vm8  ;;  %vm238_vm1 = vcmp.eq.f32.partialorder %v237_v26, 8.507059e+37 }
  0xc6   :  { %v245_v60 = vsub.f32 1.0, %v244_v57  ;;  %v261_v0 = vmul.f32 %v1312_v52, %v260_v59  ;;  %v1852_v34 = vsel %vm238_vm1, %v240_v31, %v236_v29 }
  0xc8   :  { %v246_v3 = vmul.f32 %v1787_v54, %v245_v60  ;;  %v262_v8 = vadd.f32 %v1312_v52, %v261_v0 }
  0xc9   :  { %v1316_v61 = vpop.eup %1315 }
  0xca   :  { %v274_v63 = vmul.f32 %v1316_v61, %v227_v53  ;;  %vm279_vm3 = vweird.f32 %v1316_v61  ;;  %v247_v13 = vadd.f32 %v1787_v54, %v246_v3  ;;  %v266_v18 = vsel %vm1803_vm7, %v1312_v52, %v262_v8 }
  0xcb   :  { %vm280_vm9 = vmor %vm278_vm6, %vm279_vm3  ;;  %v1833_v27 = vsel %vm268_vm13, %v270_v22, %v266_v18 }
  0xcc   :  { %v275_v2 = vsub.f32 1.0, %v274_v63  ;;  %v251_v25 = vsel %vm1822_vm12, %v1787_v54, %v247_v13 }
  0xcd   :  { %v1842_v30 = vsel %vm253_vm15, %v255_v28, %v251_v25 }
  0xce   :  { %v276_v6 = vmul.f32 %v1316_v61, %v275_v2 }
  0xd0   :  { %v277_v11 = vadd.f32 %v1316_v61, %v276_v6 }
  0xd2   :  { %v281_v17 = vsel %vm280_vm9, %v1316_v61, %v277_v11 }
  0xd3   :  { %v1818_v21 = vsel %vm283_vm11, %v285_v14, %v281_v17 }
  0xd4   :  { %348 = vmatpush.msra.mxu1 %v1818_v21  ;;  %1284 = vmatpush.msra.mxu3 %v1818_v21 }
  0xd6   :  { %349 = vmatpush.msra.mxu1 %v1833_v27  ;;  %1285 = vmatpush.msra.mxu3 %v1833_v27 }
  0xd8   :  { %350 = vmatpush.msra.mxu1 %v1842_v30  ;;  %1286 = vmatpush.msra.mxu3 %v1842_v30 }
  0xda   :  { %351 = vmatpush.msra.mxu1 %v1852_v34  ;;  %1287 = vmatpush.msra.mxu3 %v1852_v34 }
  0xdb   :  { %1228 = vmatmul.msk.f32.vlgmr.msra.gmra.mxu1 %vm170_vm0, %v296_v32  ;;  %1230 = vmatmul.msk.f32.vlgmr.msra.gmra.mxu3 %vm170_vm0, %v298_v33 }
  0xe3   :  { %1229 = vmatmul.msk.f32.gmra.mxu1 %vm170_vm0, %v297_v36  ;;  %1231 = vmatmul.msk.f32.gmra.mxu3 %vm170_vm0, %v299_v37 }
 0x158   :  { %v353_v41 = vpop.f32.mrf.mxu1 }
 0x159   :  { %v354_v42 = vadd.f32 %v353_v41, %v307_v40 }
 0x15b   :  { %v1232_v43 = vmul.f32 -1.442695, %v354_v42 }
 0x15d   :  { %1317 = vpow2.f32 %v1232_v43  ;;  %v449_v43 = vld [vmem:[%s2129_s7] sm:$0xff] }
 0x15e   :  { %v359_v45 = vpop.f32.mrf.mxu3 }
 0x15f   :  { %v360_v46 = vadd.f32 %v359_v45, %v317_v44  ;;  %v450_v45 = vld [vmem:[%s2129_s7 + $0x8] sm:$0xff] }
 0x160   :  { %v356_v48 = vpop.f32.mrf.mxu1 }
 0x161   :  { %v1234_v49 = vmul.f32 -1.442695, %v360_v46  ;;  %v357_v50 = vadd.f32 %v356_v48, %v312_v47  ;;  %v451_v46 = vld [vmem:[%s2129_s7 + $0x10] sm:$0xff]  ;;  %v452_v47 = vld [vmem:[%s2129_s7 + $0x18] sm:$0xff]  ;;  %v475_v48 = vpop.permute.xlu2 %474 }
 0x163   :  { %1319 = vpow2.f32 %v1234_v49  ;;  %v1233_v51 = vmul.f32 -1.442695, %v357_v50  ;;  %v1318_v52 = vpop.eup %1317  ;;  %v465_v50 = vpop.permute.xlu1 %464 }
 0x164   :  { %v1872_v56 = vadd.f32 1.0, %v1318_v52 }
 0x165   :  { %1321 = vpow2.f32 %v1233_v51 }
 0x166   :  { %v362_v53 = vpop.f32.mrf.mxu3  ;;  %v392_v35 = vand.u32 2147483648, %v1872_v56  ;;  %vm386_vm14 = vweird.f32 %v1872_v56  ;;  %v390_v37 = vand.u32 2147483647, %v1872_v56 }
 0x167   :  { %v363_v54 = vadd.f32 %v362_v53, %v322_v39 }
 0x168   :  { %v393_v42 = vor.u32 1.1754944e-38, %v392_v35 }
 0x169   :  { %v1320_v55 = vpop.eup %1319  ;;  %v1235_v57 = vmul.f32 -1.442695, %v363_v54  ;;  %v460_v52 = vpop.permute.xlu2 %459 }
 0x16a   :  { %v379_v58 = vadd.f32 1.0, %v1320_v55 }
 0x16b   :  { %v1322_v59 = vpop.eup %1321  ;;  %1323 = vpow2.f32 %v1235_v57  ;;  %v470_v57 = vpop.permute.xlu0 %469 }
 0x16c   :  { %1325 = vrcp.f32 %v379_v58  ;;  %v378_v60 = vadd.f32 1.0, %v1322_v59  ;;  %vm416_vm4 = vweird.f32 %v379_v58  ;;  %v420_v18 = vand.u32 2147483647, %v379_v58 }
 0x16d   :  { %1327 = vrcp.f32 %v1872_v56  ;;  %v422_v19 = vand.u32 2147483648, %v379_v58 }
 0x16e   :  { %1329 = vrcp.f32 %v378_v60  ;;  %vm401_vm10 = vweird.f32 %v378_v60  ;;  %v405_v25 = vand.u32 2147483647, %v378_v60  ;;  %v407_v26 = vand.u32 2147483648, %v378_v60 }
 0x16f   :  { %v423_v33 = vor.u32 1.1754944e-38, %v422_v19  ;;  %vm421_vm13 = vcmp.eq.f32.partialorder %v420_v18, 8.507059e+37 }
 0x170   :  { %v408_v39 = vor.u32 1.1754944e-38, %v407_v26  ;;  %vm406_vm1 = vcmp.eq.f32.partialorder %v405_v25, 8.507059e+37 }
 0x171   :  { %v1324_v61 = vpop.eup %1323 }
 0x172   :  { %v1326_v62 = vpop.eup %1325  ;;  %v380_v63 = vadd.f32 1.0, %v1324_v61 }
 0x173   :  { %v1328_v0 = vpop.eup %1327  ;;  %v412_v1 = vmul.f32 %v1326_v62, %v379_v58  ;;  %vm417_vm2 = vweird.f32 %v1326_v62 }
 0x174   :  { %v1330_v2 = vpop.eup %1329  ;;  %1331 = vrcp.f32 %v380_v63  ;;  %v382_v4 = vmul.f32 %v1328_v0, %v1872_v56  ;;  %v437_v13 = vand.u32 2147483648, %v380_v63  ;;  %v435_v16 = vand.u32 2147483647, %v380_v63  ;;  %vm1876_vm7 = vmor %vm416_vm4, %vm417_vm2 }
 0x175   :  { %v397_v3 = vmul.f32 %v1330_v2, %v378_v60  ;;  %v413_v5 = vsub.f32 1.0, %v412_v1  ;;  %vm387_vm5 = vweird.f32 %v1328_v0  ;;  %vm431_vm6 = vweird.f32 %v380_v63 }
 0x176   :  { %v383_v8 = vsub.f32 1.0, %v382_v4  ;;  %vm402_vm8 = vweird.f32 %v1330_v2  ;;  %v438_v24 = vor.u32 1.1754944e-38, %v437_v13  ;;  %vm436_vm11 = vcmp.eq.f32.partialorder %v435_v16, 8.507059e+37  ;;  %vm388_vm15 = vmor %vm386_vm14, %vm387_vm5 }
 0x177   :  { %v398_v6 = vsub.f32 1.0, %v397_v3  ;;  %v414_v10 = vmul.f32 %v1326_v62, %v413_v5  ;;  %vm403_vm12 = vmor %vm401_vm10, %vm402_vm8  ;;  %vm391_vm2 = vcmp.eq.f32.partialorder %v390_v37, 8.507059e+37 }
 0x178   :  { %v384_v14 = vmul.f32 %v1328_v0, %v383_v8 }
 0x179   :  { %v399_v12 = vmul.f32 %v1330_v2, %v398_v6  ;;  %v415_v17 = vadd.f32 %v1326_v62, %v414_v10 }
 0x17a   :  { %v1332_v7 = vpop.eup %1331  ;;  %v385_v31 = vadd.f32 %v1328_v0, %v384_v14 }
 0x17b   :  { %v427_v9 = vmul.f32 %v1332_v7, %v380_v63  ;;  %vm432_vm3 = vweird.f32 %v1332_v7  ;;  %v400_v23 = vadd.f32 %v1330_v2, %v399_v12  ;;  %v419_v29 = vsel %vm1876_vm7, %v1326_v62, %v415_v17 }
 0x17c   :  { %vm433_vm9 = vmor %vm431_vm6, %vm432_vm3  ;;  %v1888_v38 = vsel %vm421_vm13, %v423_v33, %v419_v29  ;;  %v389_v40 = vsel %vm388_vm15, %v1328_v0, %v385_v31 }
 0x17d   :  { %v428_v11 = vsub.f32 1.0, %v427_v9  ;;  %v404_v36 = vsel %vm403_vm12, %v1330_v2, %v400_v23  ;;  %v1898_v44 = vsel %vm391_vm2, %v393_v42, %v389_v40 }
 0x17e   :  { %v1892_v41 = vsel %vm406_vm1, %v408_v39, %v404_v36 }
 0x17f   :  { %v429_v15 = vmul.f32 %v1332_v7, %v428_v11 }
 0x181   :  { %v430_v20 = vadd.f32 %v1332_v7, %v429_v15 }
 0x183   :  { %v434_v28 = vsel %vm433_vm9, %v1332_v7, %v430_v20 }
 0x184   :  { %v1882_v32 = vsel %vm436_vm11, %v438_v24, %v434_v28 }
 0x185   :  { %501 = vmatpush.msrb.mxu2 %v1882_v32 }
 0x187   :  { %502 = vmatpush.msrb.mxu2 %v1888_v38 }
 0x189   :  { %503 = vmatpush.msrb.mxu2 %v1892_v41 }
 0x18b   :  { %504 = vmatpush.msrb.mxu2 %v1898_v44 }
 0x18c   :  { %1236 = vmatmul.msk.f32.vlgmr.msrb.gmra.mxu2 %vm170_vm0, %v449_v43 }
 0x194   :  { %1237 = vmatmul.msk.f32.gmra.mxu2 %vm170_vm0, %v450_v45 }
 0x19c   :  { %1238 = vmatmul.msk.f32.gmra.mxu2 %vm170_vm0, %v451_v46 }
 0x1a4   :  { %1239 = vmatmul.msk.f32.gmra.mxu2 %vm170_vm0, %v452_v47 }
 0x20f   :  { %v506_v49 = vpop.f32.mrf.mxu2 }
 0x210   :  { %v507_v54 = vadd.f32 %v506_v49, %v460_v52 }
 0x212   :  { %v1240_v56 = vmul.f32 -1.442695, %v507_v54 }
 0x217   :  { %v509_v51 = vpop.f32.mrf.mxu2 }
 0x218   :  { %v510_v53 = vadd.f32 %v509_v51, %v465_v50 }
 0x21a   :  { %v1241_v55 = vmul.f32 -1.442695, %v510_v53 }
 0x21c   :  { %1333 = vpow2.f32 %v1241_v55 }
 0x21d   :  { %1335 = vpow2.f32 %v1240_v56  ;;  %v602_v56 = vld [vmem:[#allocation5] sm:$0xff] }
 0x21f   :  { %v512_v58 = vpop.f32.mrf.mxu2 }
 0x220   :  { %v513_v59 = vadd.f32 %v512_v58, %v470_v57  ;;  %v603_v58 = vld [vmem:[#allocation5 + $0x8] sm:$0xff] }
 0x222   :  { %v1242_v60 = vmul.f32 -1.442695, %v513_v59  ;;  %v1334_v61 = vpop.eup %1333  ;;  %v604_v59 = vld [vmem:[#allocation5 + $0x10] sm:$0xff] }
 0x223   :  { %v1336_v62 = vpop.eup %1335  ;;  %v1914_v63 = vadd.f32 1.0, %v1334_v61  ;;  %v628_v61 = vpop.permute.xlu0 %627 }
 0x224   :  { %1337 = vpow2.f32 %v1242_v60  ;;  %v1916_v3 = vadd.f32 1.0, %v1336_v62  ;;  %v605_v60 = vld [vmem:[#allocation5 + $0x18] sm:$0xff] }
 0x225   :  { %1339 = vrcp.f32 %v1914_v63  ;;  %vm554_vm11 = vweird.f32 %v1914_v63  ;;  %v558_v39 = vand.u32 2147483647, %v1914_v63  ;;  %v560_v40 = vand.u32 2147483648, %v1914_v63 }
 0x226   :  { %vm539_vm15 = vweird.f32 %v1916_v3  ;;  %v543_v50 = vand.u32 2147483647, %v1916_v3 }
 0x227   :  { %v515_v0 = vpop.f32.mrf.mxu2  ;;  %v561_v52 = vor.u32 1.1754944e-38, %v560_v40  ;;  %vm559_vm2 = vcmp.eq.f32.partialorder %v558_v39, 8.507059e+37 }
 0x228   :  { %v516_v1 = vadd.f32 %v515_v0, %v475_v48  ;;  %v545_v48 = vand.u32 2147483648, %v1916_v3 }
 0x22a   :  { %v1338_v2 = vpop.eup %1337  ;;  %v1243_v4 = vmul.f32 -1.442695, %v516_v1  ;;  %v546_v55 = vor.u32 1.1754944e-38, %v545_v48 }
 0x22b   :  { %v532_v5 = vadd.f32 1.0, %v1338_v2  ;;  %v1340_v6 = vpop.eup %1339  ;;  %v613_v1 = vpop.permute.xlu0 %612 }
 0x22c   :  { %1341 = vpow2.f32 %v1243_v4  ;;  %v550_v12 = vmul.f32 %v1340_v6, %v1914_v63  ;;  %vm555_vm6 = vweird.f32 %v1340_v6  ;;  %v618_v63 = vpop.permute.xlu2 %617 }
 0x22d   :  { %1343 = vrcp.f32 %v532_v5  ;;  %vm569_vm5 = vweird.f32 %v532_v5  ;;  %v575_v29 = vand.u32 2147483648, %v532_v5  ;;  %v573_v35 = vand.u32 2147483647, %v532_v5  ;;  %vm556_vm13 = vmor %vm554_vm11, %vm555_vm6 }
 0x22e   :  { %1345 = vrcp.f32 %v1916_v3  ;;  %v551_v15 = vsub.f32 1.0, %v550_v12 }
 0x22f   :  { %v576_v47 = vor.u32 1.1754944e-38, %v575_v29  ;;  %vm574_vm14 = vcmp.eq.f32.partialorder %v573_v35, 8.507059e+37 }
 0x230   :  { %v552_v22 = vmul.f32 %v1340_v6, %v551_v15 }
 0x232   :  { %v1342_v7 = vpop.eup %1341  ;;  %v553_v36 = vadd.f32 %v1340_v6, %v552_v22 }
 0x233   :  { %v1344_v8 = vpop.eup %1343  ;;  %v533_v9 = vadd.f32 1.0, %v1342_v7 }
 0x234   :  { %v1346_v10 = vpop.eup %1345  ;;  %v565_v11 = vmul.f32 %v1344_v8, %v532_v5  ;;  %vm570_vm3 = vweird.f32 %v1344_v8  ;;  %v557_v49 = vsel %vm556_vm13, %v1340_v6, %v553_v36  ;;  %v623_v6 = vpop.permute.xlu1 %622 }
 0x235   :  { %1347 = vrcp.f32 %v533_v9  ;;  %v535_v13 = vmul.f32 %v1346_v10, %v1916_v3  ;;  %v590_v23 = vand.u32 2147483648, %v533_v9  ;;  %v588_v26 = vand.u32 2147483647, %v533_v9  ;;  %vm1922_vm9 = vmor %vm569_vm5, %vm570_vm3 }
 0x236   :  { %v566_v14 = vsub.f32 1.0, %v565_v11  ;;  %vm540_vm7 = vweird.f32 %v1346_v10  ;;  %vm584_vm8 = vweird.f32 %v533_v9  ;;  %v1942_v54 = vsel %vm559_vm2, %v561_v52, %v557_v49 }
 0x237   :  { %v536_v17 = vsub.f32 1.0, %v535_v13  ;;  %v591_v37 = vor.u32 1.1754944e-38, %v590_v23  ;;  %vm589_vm12 = vcmp.eq.f32.partialorder %v588_v26, 8.507059e+37  ;;  %vm541_vm1 = vmor %vm539_vm15, %vm540_vm7  ;;  %vm544_vm3 = vcmp.eq.f32.partialorder %v543_v50, 8.507059e+37 }
 0x238   :  { %v567_v19 = vmul.f32 %v1344_v8, %v566_v14 }
 0x239   :  { %v537_v24 = vmul.f32 %v1346_v10, %v536_v17 }
 0x23a   :  { %v568_v28 = vadd.f32 %v1344_v8, %v567_v19 }
 0x23b   :  { %v1348_v16 = vpop.eup %1347  ;;  %v538_v45 = vadd.f32 %v1346_v10, %v537_v24 }
 0x23c   :  { %v580_v18 = vmul.f32 %v1348_v16, %v533_v9  ;;  %vm585_vm4 = vweird.f32 %v1348_v16  ;;  %v572_v43 = vsel %vm1922_vm9, %v1344_v8, %v568_v28 }
 0x23d   :  { %vm586_vm10 = vmor %vm584_vm8, %vm585_vm4  ;;  %v1938_v51 = vsel %vm574_vm14, %v576_v47, %v572_v43  ;;  %v542_v53 = vsel %vm541_vm1, %v1346_v10, %v538_v45 }
 0x23e   :  { %v581_v20 = vsub.f32 1.0, %v580_v18  ;;  %v1945_v57 = vsel %vm544_vm3, %v546_v55, %v542_v53 }
 0x240   :  { %v582_v25 = vmul.f32 %v1348_v16, %v581_v20 }
 0x242   :  { %v583_v31 = vadd.f32 %v1348_v16, %v582_v25 }
 0x244   :  { %v587_v42 = vsel %vm586_vm10, %v1348_v16, %v583_v31 }
 0x245   :  { %v1931_v46 = vsel %vm589_vm12, %v591_v37, %v587_v42 }
 0x246   :  { %654 = vmatpush.msrb.mxu3 %v1931_v46 }
 0x248   :  { %655 = vmatpush.msrb.mxu3 %v1938_v51 }
 0x24a   :  { %656 = vmatpush.msrb.mxu3 %v1942_v54 }
 0x24c   :  { %657 = vmatpush.msrb.mxu3 %v1945_v57 }
 0x24d   :  { %1244 = vmatmul.msk.f32.vlgmr.msrb.gmra.mxu3 %vm170_vm0, %v602_v56 }
 0x255   :  { %1245 = vmatmul.msk.f32.gmra.mxu3 %vm170_vm0, %v603_v58 }
 0x25d   :  { %1246 = vmatmul.msk.f32.gmra.mxu3 %vm170_vm0, %v604_v59 }
 0x265   :  { %1247 = vmatmul.msk.f32.gmra.mxu3 %vm170_vm0, %v605_v60 }
 0x2d0   :  { %v659_v62 = vpop.f32.mrf.mxu3 }
 0x2d1   :  { %v660_v3 = vadd.f32 %v659_v62, %v613_v1 }
 0x2d3   :  { %v1248_v5 = vmul.f32 -1.442695, %v660_v3 }
 0x2d8   :  { %v662_v0 = vpop.f32.mrf.mxu3 }
 0x2d9   :  { %v663_v2 = vadd.f32 %v662_v0, %v618_v63 }
 0x2db   :  { %v1249_v4 = vmul.f32 -1.442695, %v663_v2 }
 0x2dd   :  { %1349 = vpow2.f32 %v1249_v4 }
 0x2de   :  { %1351 = vpow2.f32 %v1248_v5 }
 0x2e0   :  { %v665_v7 = vpop.f32.mrf.mxu3 }
 0x2e1   :  { %v666_v8 = vadd.f32 %v665_v7, %v623_v6 }
 0x2e3   :  { %v1250_v9 = vmul.f32 -1.442695, %v666_v8  ;;  %v1350_v10 = vpop.eup %1349 }
 0x2e4   :  { %v1352_v11 = vpop.eup %1351  ;;  %v1952_v12 = vadd.f32 1.0, %v1350_v10 }
 0x2e5   :  { %1353 = vpow2.f32 %v1250_v9  ;;  %v1954_v16 = vadd.f32 1.0, %v1352_v11  ;;  %v755_v9 = vld [vmem:[#allocation8] sm:$0xff]  ;;  %v756_v11 = vld [vmem:[#allocation8 + $0x8] sm:$0xff] }
 0x2e6   :  { %1355 = vrcp.f32 %v1952_v12  ;;  %vm707_vm12 = vweird.f32 %v1952_v12  ;;  %v711_v58 = vand.u32 2147483647, %v1952_v12  ;;  %v713_v59 = vand.u32 2147483648, %v1952_v12 }
 0x2e7   :  { %v698_v1 = vand.u32 2147483648, %v1954_v16  ;;  %vm692_vm1 = vweird.f32 %v1954_v16  ;;  %v696_v3 = vand.u32 2147483647, %v1954_v16 }
 0x2e8   :  { %v668_v13 = vpop.f32.mrf.mxu3  ;;  %v714_v5 = vor.u32 1.1754944e-38, %v713_v59  ;;  %vm712_vm3 = vcmp.eq.f32.partialorder %v711_v58, 8.507059e+37 }
 0x2e9   :  { %v669_v14 = vadd.f32 %v668_v13, %v628_v61  ;;  %v699_v8 = vor.u32 1.1754944e-38, %v698_v1  ;;  %v758_v13 = vld [vmem:[#allocation8 + $0x18] sm:$0xff] }
 0x2eb   :  { %v1354_v15 = vpop.eup %1353  ;;  %v1251_v17 = vmul.f32 -1.442695, %v669_v14  ;;  %v781_v14 = vpop.permute.xlu1 %780 }
 0x2ec   :  { %v685_v18 = vadd.f32 1.0, %v1354_v15  ;;  %v1356_v19 = vpop.eup %1355 }
 0x2ed   :  { %1357 = vpow2.f32 %v1251_v17  ;;  %v703_v26 = vmul.f32 %v1356_v19, %v1952_v12  ;;  %vm708_vm7 = vweird.f32 %v1356_v19  ;;  %v757_v12 = vld [vmem:[#allocation8 + $0x10] sm:$0xff] }
 0x2ee   :  { %1359 = vrcp.f32 %v685_v18  ;;  %vm722_vm6 = vweird.f32 %v685_v18  ;;  %v728_v49 = vand.u32 2147483648, %v685_v18  ;;  %v726_v53 = vand.u32 2147483647, %v685_v18  ;;  %vm709_vm14 = vmor %vm707_vm12, %vm708_vm7 }
 0x2ef   :  { %1361 = vrcp.f32 %v1954_v16  ;;  %v704_v31 = vsub.f32 1.0, %v703_v26 }
 0x2f0   :  { %v729_v0 = vor.u32 1.1754944e-38, %v728_v49  ;;  %vm727_vm15 = vcmp.eq.f32.partialorder %v726_v53, 8.507059e+37 }
 0x2f1   :  { %v705_v40 = vmul.f32 %v1356_v19, %v704_v31 }
 0x2f3   :  { %v1358_v20 = vpop.eup %1357  ;;  %v706_v55 = vadd.f32 %v1356_v19, %v705_v40 }
 0x2f4   :  { %v1360_v22 = vpop.eup %1359  ;;  %v686_v23 = vadd.f32 1.0, %v1358_v20 }
 0x2f5   :  { %v1362_v24 = vpop.eup %1361  ;;  %v718_v25 = vmul.f32 %v1360_v22, %v685_v18  ;;  %vm723_vm4 = vweird.f32 %v1360_v22  ;;  %v710_v2 = vsel %vm709_vm14, %v1356_v19, %v706_v55  ;;  %v771_v18 = vpop.permute.xlu0 %770 }
 0x2f6   :  { %1363 = vrcp.f32 %v686_v23  ;;  %v688_v28 = vmul.f32 %v1362_v24, %v1954_v16  ;;  %v743_v42 = vand.u32 2147483648, %v686_v23  ;;  %v741_v47 = vand.u32 2147483647, %v686_v23  ;;  %vm1960_vm10 = vmor %vm722_vm6, %vm723_vm4  ;;  %v766_v16 = vpop.permute.xlu1 %765 }
 0x2f7   :  { %v719_v29 = vsub.f32 1.0, %v718_v25  ;;  %vm693_vm8 = vweird.f32 %v1362_v24  ;;  %vm737_vm9 = vweird.f32 %v686_v23  ;;  %v1980_v7 = vsel %vm712_vm3, %v714_v5, %v710_v2 }
 0x2f8   :  { %v689_v35 = vsub.f32 1.0, %v688_v28  ;;  %v744_v56 = vor.u32 1.1754944e-38, %v743_v42  ;;  %vm742_vm13 = vcmp.eq.f32.partialorder %v741_v47, 8.507059e+37  ;;  %vm694_vm2 = vmor %vm692_vm1, %vm693_vm8  ;;  %vm697_vm4 = vcmp.eq.f32.partialorder %v696_v3, 8.507059e+37 }
 0x2f9   :  { %v720_v37 = vmul.f32 %v1360_v22, %v719_v29 }
 0x2fa   :  { %v690_v43 = vmul.f32 %v1362_v24, %v689_v35 }
 0x2fb   :  { %v721_v48 = vadd.f32 %v1360_v22, %v720_v37 }
 0x2fc   :  { %v1364_v33 = vpop.eup %1363  ;;  %v691_v62 = vadd.f32 %v1362_v24, %v690_v43 }
 0x2fd   :  { %v733_v36 = vmul.f32 %v1364_v33, %v686_v23  ;;  %vm738_vm5 = vweird.f32 %v1364_v33  ;;  %v725_v61 = vsel %vm1960_vm10, %v1360_v22, %v721_v48 }
 0x2fe   :  { %vm739_vm11 = vmor %vm737_vm9, %vm738_vm5  ;;  %v1976_v4 = vsel %vm727_vm15, %v729_v0, %v725_v61  ;;  %v695_v6 = vsel %vm694_vm2, %v1362_v24, %v691_v62  ;;  %v776_v24 = vpop.permute.xlu2 %775 }
 0x2ff   :  { %v734_v39 = vsub.f32 1.0, %v733_v36  ;;  %v1983_v10 = vsel %vm697_vm4, %v699_v8, %v695_v6 }
 0x301   :  { %v735_v45 = vmul.f32 %v1364_v33, %v734_v39 }
 0x303   :  { %v736_v50 = vadd.f32 %v1364_v33, %v735_v45 }
 0x305   :  { %v740_v60 = vsel %vm739_vm11, %v1364_v33, %v736_v50 }
 0x306   :  { %v1969_v63 = vsel %vm742_vm13, %v744_v56, %v740_v60 }
 0x307   :  { %807 = vmatpush.msrb.mxu0 %v1969_v63  ;;  %v750_v6 = vmul.f32 %v1969_v63, %v1969_v63 }
 0x309   :  { %808 = vmatpush.msrb.mxu0 %v1976_v4 }
 0x30b   :  { %809 = vmatpush.msrb.mxu0 %v1980_v7 }
 0x30d   :  { %810 = vmatpush.msrb.mxu0 %v1983_v10 }
 0x30e   :  { %1252 = vmatmul.msk.f32.vlgmr.msrb.gmra.mxu0 %vm170_vm0, %v755_v9 }
 0x316   :  { %1253 = vmatmul.msk.f32.gmra.mxu0 %vm170_vm0, %v756_v11 }
 0x31e   :  { %1254 = vmatmul.msk.f32.gmra.mxu0 %vm170_vm0, %v757_v12 }
 0x326   :  { %1255 = vmatmul.msk.f32.gmra.mxu0 %vm170_vm0, %v758_v13 }
 0x38b   :  { %v812_v15 = vpop.f32.mrf.mxu0 }
 0x38c   :  { %v813_v17 = vadd.f32 %v812_v15, %v766_v16 }
 0x38e   :  { %v1256_v19 = vmul.f32 -1.442695, %v813_v17 }
 0x390   :  { %1365 = vpow2.f32 %v1256_v19 }
 0x393   :  { %v815_v20 = vpop.f32.mrf.mxu0 }
 0x394   :  { %v816_v22 = vadd.f32 %v815_v20, %v771_v18 }
 0x396   :  { %v1257_v23 = vmul.f32 -1.442695, %v816_v22  ;;  %v1366_v28 = vpop.eup %1365 }
 0x397   :  { %v1990_v35 = vadd.f32 1.0, %v1366_v28 }
 0x398   :  { %1367 = vpow2.f32 %v1257_v23 }
 0x399   :  { %vm845_vm6 = vweird.f32 %v1990_v35  ;;  %v849_v9 = vand.u32 2147483647, %v1990_v35  ;;  %v851_v18 = vand.u32 2147483648, %v1990_v35 }
 0x39b   :  { %v818_v25 = vpop.f32.mrf.mxu0 }
 0x39c   :  { %v819_v26 = vadd.f32 %v818_v25, %v776_v24  ;;  %v597_v25 = vmul.f32 %v1931_v46, %v1931_v46 }
 0x39e   :  { %v1368_v29 = vpop.eup %1367  ;;  %v1258_v31 = vmul.f32 -1.442695, %v819_v26 }
 0x39f   :  { %v837_v33 = vadd.f32 1.0, %v1368_v29 }
 0x3a0   :  { %1369 = vpow2.f32 %v1258_v31 }
 0x3a1   :  { %1371 = vrcp.f32 %v837_v33  ;;  %vm860_vm10 = vweird.f32 %v837_v33  ;;  %v866_v8 = vand.u32 2147483648, %v837_v33  ;;  %v864_v13 = vand.u32 2147483647, %v837_v33 }
 0x3a2   :  { %1373 = vrcp.f32 %v1990_v35 }
 0x3a3   :  { %v821_v36 = vpop.f32.mrf.mxu0  ;;  %v867_v24 = vor.u32 1.1754944e-38, %v866_v8  ;;  %vm865_vm2 = vcmp.eq.f32.partialorder %v864_v13, 8.507059e+37  ;;  %v749_v8 = vmul.f32 %v1976_v4, %v1976_v4  ;;  %v747_v13 = vmul.f32 %v1983_v10, %v1983_v10 }
 0x3a4   :  { %v822_v37 = vadd.f32 %v821_v36, %v781_v14 }
 0x3a6   :  { %v1370_v39 = vpop.eup %1369  ;;  %v1259_v40 = vmul.f32 -1.442695, %v822_v37 }
 0x3a7   :  { %v838_v42 = vadd.f32 1.0, %v1370_v39  ;;  %v1372_v43 = vpop.eup %1371  ;;  %v930_v39 = vpop.permute.xlu2 %929 }
 0x3a8   :  { %1375 = vpow2.f32 %v1259_v40  ;;  %v1374_v45 = vpop.eup %1373  ;;  %v856_v47 = vmul.f32 %v1372_v43, %v837_v33  ;;  %vm861_vm8 = vweird.f32 %v1372_v43  ;;  %v852_v33 = vor.u32 1.1754944e-38, %v851_v18 }
 0x3a9   :  { %1377 = vrcp.f32 %v838_v42  ;;  %v841_v49 = vmul.f32 %v1374_v45, %v1990_v35  ;;  %v879_v1 = vand.u32 2147483647, %v838_v42  ;;  %v881_v2 = vand.u32 2147483648, %v838_v42  ;;  %vm2002_vm13 = vmor %vm860_vm10, %vm861_vm8 }
 0x3aa   :  { %v857_v55 = vsub.f32 1.0, %v856_v47  ;;  %vm875_vm7 = vweird.f32 %v838_v42  ;;  %vm846_vm11 = vweird.f32 %v1374_v45  ;;  %v751_v18 = vsub.f32 %v1983_v10, %v747_v13 }
 0x3ab   :  { %v842_v58 = vsub.f32 1.0, %v841_v49  ;;  %vm880_vm12 = vcmp.eq.f32.partialorder %v879_v1, 8.507059e+37  ;;  %v882_v16 = vor.u32 1.1754944e-38, %v881_v2  ;;  %vm2012_vm15 = vmor %vm845_vm6, %vm846_vm11  ;;  %v939_v1 = vld [vmem:[#allocation10 + $0x18] sm:$0xff]  ;;  %v288_v13 = vmul.f32 %v1852_v34, %v1852_v34 }
 0x3ac   :  { %v858_v60 = vmul.f32 %v1372_v43, %v857_v55 }
 0x3ad   :  { %v843_v62 = vmul.f32 %v1374_v45, %v842_v58 }
 0x3ae   :  { %v1376_v48 = vpop.eup %1375  ;;  %v859_v5 = vadd.f32 %v1372_v43, %v858_v60 }
 0x3af   :  { %v1378_v50 = vpop.eup %1377  ;;  %v839_v52 = vadd.f32 1.0, %v1376_v48  ;;  %v844_v14 = vadd.f32 %v1374_v45, %v843_v62  ;;  %v937_v62 = vld [vmem:[#allocation10 + $0x8] sm:$0xff] }
 0x3b0   :  { %v871_v53 = vmul.f32 %v1378_v50, %v838_v42  ;;  %vm876_vm5 = vweird.f32 %v1378_v50  ;;  %v863_v22 = vsel %vm2002_vm13, %v1372_v43, %v859_v5 }
 0x3b1   :  { %1379 = vrcp.f32 %v839_v52  ;;  %vm1995_vm9 = vmor %vm875_vm7, %vm876_vm5  ;;  %v896_v15 = vand.u32 2147483648, %v839_v52  ;;  %v894_v20 = vand.u32 2147483647, %v839_v52  ;;  %vm890_vm1 = vweird.f32 %v839_v52 }
 0x3b2   :  { %v872_v56 = vsub.f32 1.0, %v871_v53  ;;  %v848_v28 = vsel %vm2012_vm15, %v1374_v45, %v844_v14  ;;  %v868_v31 = vsel %vm865_vm2, %v867_v24, %v863_v22  ;;  %vm850_vm5 = vcmp.eq.f32.partialorder %v849_v9, 8.507059e+37  ;;  %v925_v53 = vpop.permute.xlu0 %924  ;;  %v985_v22 = vld [vmem:[#allocation7] sm:$0xff] }
 0x3b3   :  { %v897_v29 = vor.u32 1.1754944e-38, %v896_v15  ;;  %vm895_vm4 = vcmp.eq.f32.partialorder %v894_v20, 8.507059e+37  ;;  %v853_v40 = vsel %vm850_vm5, %v852_v33, %v848_v28  ;;  %v901_v43 = vmul.f32 %v868_v31, %v868_v31 }
 0x3b4   :  { %v873_v59 = vmul.f32 %v1378_v50, %v872_v56  ;;  %v900_v49 = vmul.f32 %v853_v40, %v853_v40  ;;  %v920_v56 = vpop.permute.xlu1 %919  ;;  %v748_v9 = vmul.f32 %v1980_v7, %v1980_v7  ;;  %v753_v14 = vsub.f32 %v1976_v4, %v749_v8  ;;  %v988_v4 = vld [vmem:[#allocation7 + $0x18] sm:$0xff] }
 0x3b5   :  { %v595_v28 = vmul.f32 %v1942_v54, %v1942_v54  ;;  %v594_v33 = vmul.f32 %v1945_v57, %v1945_v57  ;;  %v290_v8 = vmul.f32 %v1833_v27, %v1833_v27 }
 0x3b6   :  { %v874_v61 = vadd.f32 %v1378_v50, %v873_v59  ;;  %v904_v55 = vsub.f32 %v853_v40, %v900_v49  ;;  %v915_v59 = vpop.permute.xlu2 %914 }
 0x3b7   :  { %v1380_v0 = vpop.eup %1379  ;;  %v598_v40 = vsub.f32 %v1945_v57, %v594_v33 }
 0x3b8   :  { %v886_v3 = vmul.f32 %v1380_v0, %v839_v52  ;;  %v878_v12 = vsel %vm1995_vm9, %v1378_v50, %v874_v61  ;;  %vm891_vm14 = vweird.f32 %v1380_v0  ;;  %v905_v52 = vsub.f32 %v868_v31, %v901_v43  ;;  %v936_v61 = vld [vmem:[#allocation10] sm:$0xff] }
 0x3b9   :  { %v883_v23 = vsel %vm880_vm12, %v882_v16, %v878_v12  ;;  %vm892_vm3 = vmor %vm890_vm1, %vm891_vm14  ;;  %v932_v60 = vmul.f32 %v915_v59, %v904_v55  ;;  %v752_v16 = vsub.f32 %v1980_v7, %v748_v9  ;;  %v289_v9 = vmul.f32 %v1842_v30, %v1842_v30 }
 0x3ba   :  { %v887_v11 = vsub.f32 1.0, %v886_v3  ;;  %v902_v37 = vmul.f32 %v883_v23, %v883_v23  ;;  %v933_v58 = vmul.f32 %v920_v56, %v905_v52  ;;  %v443_v52 = vmul.f32 %v1888_v38, %v1888_v38 }
 0x3bb   :  { %v441_v56 = vmul.f32 %v1898_v44, %v1898_v44 }
 0x3bc   :  { %v888_v19 = vmul.f32 %v1380_v0, %v887_v11  ;;  %v906_v48 = vsub.f32 %v883_v23, %v902_v37  ;;  %v754_v11 = vsub.f32 %v1969_v63, %v750_v6  ;;  %v986_v63 = vld [vmem:[#allocation7 + $0x8] sm:$0xff]  ;;  %v987_v23 = vld [vmem:[#allocation7 + $0x10] sm:$0xff]  ;;  %v291_v6 = vmul.f32 %v1818_v21, %v1818_v21 }
 0x3be   :  { %v889_v26 = vadd.f32 %v1380_v0, %v888_v19  ;;  %v934_v45 = vmul.f32 %v925_v53, %v906_v48  ;;  %v1036_v48 = vld [vmem:[#allocation2 + $0x10] sm:$0xff]  ;;  %v442_v53 = vmul.f32 %v1892_v41, %v1892_v41 }
 0x3c0   :  { %v893_v36 = vsel %vm892_vm3, %v1380_v0, %v889_v26  ;;  %v938_v0 = vld [vmem:[#allocation10 + $0x10] sm:$0xff]  ;;  %v596_v26 = vmul.f32 %v1938_v51, %v1938_v51 }
 0x3c1   :  { %v898_v35 = vsel %vm895_vm4, %v897_v29, %v893_v36  ;;  %v601_v29 = vsub.f32 %v1931_v46, %v597_v25  ;;  %v1035_v46 = vld [vmem:[#allocation2 + $0x8] sm:$0xff] }
 0x3c2   :  { %v903_v42 = vmul.f32 %v898_v35, %v898_v35  ;;  %v600_v36 = vsub.f32 %v1938_v51, %v596_v26  ;;  %v1037_v51 = vld [vmem:[#allocation2 + $0x18] sm:$0xff] }
 0x3c4   :  { %v907_v47 = vsub.f32 %v898_v35, %v903_v42 }
 0x3c6   :  { %v935_v50 = vmul.f32 %v930_v39, %v907_v47  ;;  %v599_v39 = vsub.f32 %v1942_v54, %v595_v28  ;;  %v1034_v47 = vld [vmem:[#allocation2] sm:$0xff] }
 0x3c8   :  { %964 = vmatpush.msrb.mxu1 %v935_v50  ;;  %v444_v50 = vmul.f32 %v1882_v32, %v1882_v32 }
 0x3ca   :  { %965 = vmatpush.msrb.mxu1 %v934_v45  ;;  %v448_v45 = vsub.f32 %v1882_v32, %v444_v50  ;;  %v1083_v32 = vld [vmem:[%s2128_s6] sm:$0xff] }
 0x3cc   :  { %966 = vmatpush.msrb.mxu1 %v933_v58  ;;  %v447_v58 = vsub.f32 %v1888_v38, %v443_v52  ;;  %v1084_v38 = vld [vmem:[%s2128_s6 + $0x8] sm:$0xff] }
 0x3ce   :  { %967 = vmatpush.msrb.mxu1 %v932_v60  ;;  %v446_v60 = vsub.f32 %v1892_v41, %v442_v53  ;;  %v1085_v41 = vld [vmem:[%s2128_s6 + $0x10] sm:$0xff] }
 0x3cf   :  { %1260 = vmatmul.msk.f32.vlgmr.msrb.gmra.mxu1 %vm170_vm0, %v936_v61 }
 0x3d7   :  { %1261 = vmatmul.msk.f32.gmra.mxu1 %vm170_vm0, %v937_v62  ;;  %v445_v62 = vsub.f32 %v1898_v44, %v441_v56  ;;  %v1086_v44 = vld [vmem:[%s2128_s6 + $0x18] sm:$0xff] }
 0x3df   :  { %1262 = vmatmul.msk.f32.gmra.mxu1 %vm170_vm0, %v938_v0 }
 0x3e7   :  { %1263 = vmatmul.msk.f32.gmra.mxu1 %vm170_vm0, %v939_v1 }
 0x44c   :  { %v969_v2 = vpop.f32.mrf.mxu1 }
 0x44d   :  { %v981_v20 = vmul.f32 %v969_v2, %v751_v18  ;;  %v292_v18 = vsub.f32 %v1852_v34, %v288_v13  ;;  %v1135_v34 = vld [vmem:[%s2125_s3 + $0x18] sm:$0xff] }
 0x454   :  { %v972_v3 = vpop.f32.mrf.mxu1 }
 0x455   :  { %v982_v19 = vmul.f32 %v972_v3, %v752_v16  ;;  %v293_v16 = vsub.f32 %v1842_v30, %v289_v9  ;;  %v1134_v30 = vld [vmem:[%s2125_s3 + $0x10] sm:$0xff] }
 0x45c   :  { %v975_v5 = vpop.f32.mrf.mxu1 }
 0x45d   :  { %v983_v17 = vmul.f32 %v975_v5, %v753_v14  ;;  %v294_v14 = vsub.f32 %v1833_v27, %v290_v8  ;;  %v1133_v27 = vld [vmem:[%s2125_s3 + $0x8] sm:$0xff] }
 0x464   :  { %v978_v12 = vpop.f32.mrf.mxu1 }
 0x465   :  { %v984_v15 = vmul.f32 %v978_v12, %v754_v11  ;;  %v295_v11 = vsub.f32 %v1818_v21, %v291_v6  ;;  %v1132_v21 = vld [vmem:[%s2125_s3] sm:$0xff]  ;;  %s1568_s3 = smov [#allocation12]  }
 0x466   :  { %s1198_s15 = sshll.u32 %s1568_s3, 4  ;;  %s1199_s15 = int_to_ptr.vmem [resolvable:$true] %s1198_s15 }
 0x467   :  { %1013 = vmatpush.msra.mxu2 %v984_v15 }
 0x469   :  { %1014 = vmatpush.msra.mxu2 %v983_v17 }
 0x46b   :  { %1015 = vmatpush.msra.mxu2 %v982_v19 }
 0x46d   :  { %1016 = vmatpush.msra.mxu2 %v981_v20 }
 0x46e   :  { %1264 = vmatmul.msk.f32.vlgmr.msra.gmra.mxu2 %vm170_vm0, %v985_v22 }
 0x476   :  { %1265 = vmatmul.msk.f32.gmra.mxu2 %vm170_vm0, %v986_v63 }
 0x47e   :  { %1266 = vmatmul.msk.f32.gmra.mxu2 %vm170_vm0, %v987_v23 }
 0x486   :  { %1267 = vmatmul.msk.f32.gmra.mxu2 %vm170_vm0, %v988_v4 }
 0x4f1   :  { %v1018_v7 = vpop.f32.mrf.mxu2 }
 0x4f2   :  { %v1030_v43 = vmul.f32 %v1018_v7, %v598_v40 }
 0x4f9   :  { %v1021_v24 = vpop.f32.mrf.mxu2 }
 0x4fa   :  { %v1031_v42 = vmul.f32 %v1021_v24, %v599_v39 }
 0x501   :  { %v1024_v10 = vpop.f32.mrf.mxu2 }
 0x502   :  { %v1032_v35 = vmul.f32 %v1024_v10, %v600_v36 }
 0x509   :  { %v1027_v31 = vpop.f32.mrf.mxu2 }
 0x50a   :  { %v1033_v37 = vmul.f32 %v1027_v31, %v601_v29 }
 0x50c   :  { %1062 = vmatpush.msra.mxu3 %v1033_v37 }
 0x50e   :  { %1063 = vmatpush.msra.mxu3 %v1032_v35 }
 0x510   :  { %1064 = vmatpush.msra.mxu3 %v1031_v42 }
 0x512   :  { %1065 = vmatpush.msra.mxu3 %v1030_v43 }
 0x513   :  { %1268 = vmatmul.msk.f32.vlgmr.msra.gmra.mxu3 %vm170_vm0, %v1034_v47 }
 0x51b   :  { %1269 = vmatmul.msk.f32.gmra.mxu3 %vm170_vm0, %v1035_v46 }
 0x523   :  { %1270 = vmatmul.msk.f32.gmra.mxu3 %vm170_vm0, %v1036_v48 }
 0x52b   :  { %1271 = vmatmul.msk.f32.gmra.mxu3 %vm170_vm0, %v1037_v51 }
 0x596   :  { %v1067_v54 = vpop.f32.mrf.mxu3 }
 0x597   :  { %v1079_v1 = vmul.f32 %v1067_v54, %v445_v62 }
 0x59e   :  { %v1070_v49 = vpop.f32.mrf.mxu3 }
 0x59f   :  { %v1080_v0 = vmul.f32 %v1070_v49, %v446_v60 }
 0x5a6   :  { %v1073_v57 = vpop.f32.mrf.mxu3 }
 0x5a7   :  { %v1081_v61 = vmul.f32 %v1073_v57, %v447_v58 }
 0x5ae   :  { %v1076_v55 = vpop.f32.mrf.mxu3 }
 0x5af   :  { %v1082_v59 = vmul.f32 %v1076_v55, %v448_v45 }
 0x5b1   :  { %1111 = vmatpush.msra.mxu0 %v1082_v59 }
 0x5b3   :  { %1112 = vmatpush.msra.mxu0 %v1081_v61 }
 0x5b5   :  { %1113 = vmatpush.msra.mxu0 %v1080_v0 }
 0x5b7   :  { %1114 = vmatpush.msra.mxu0 %v1079_v1 }
 0x5b8   :  { %1272 = vmatmul.msk.f32.vlgmr.msra.gmra.mxu0 %vm170_vm0, %v1083_v32 }
 0x5c0   :  { %1273 = vmatmul.msk.f32.gmra.mxu0 %vm170_vm0, %v1084_v38 }
 0x5c8   :  { %1274 = vmatmul.msk.f32.gmra.mxu0 %vm170_vm0, %v1085_v41 }
 0x5d0   :  { %1275 = vmatmul.msk.f32.gmra.mxu0 %vm170_vm0, %v1086_v44 }
 0x635   :  { %v1116_v2 = vpop.f32.mrf.mxu0 }
 0x636   :  { %v1128_v20 = vmul.f32 %v1116_v2, %v292_v18 }
 0x63d   :  { %v1119_v3 = vpop.f32.mrf.mxu0 }
 0x63e   :  { %v1129_v19 = vmul.f32 %v1119_v3, %v293_v16 }
 0x645   :  { %v1122_v5 = vpop.f32.mrf.mxu0 }
 0x646   :  { %v1130_v17 = vmul.f32 %v1122_v5, %v294_v14 }
 0x64d   :  { %v1125_v12 = vpop.f32.mrf.mxu0 }
 0x64e   :  { %v1131_v15 = vmul.f32 %v1125_v12, %v295_v11 }
 0x650   :  { %1160 = vmatpush.msra.mxu1 %v1131_v15 }
 0x652   :  { %1161 = vmatpush.msra.mxu1 %v1130_v17 }
 0x654   :  { %1162 = vmatpush.msra.mxu1 %v1129_v19 }
 0x656   :  { %1163 = vmatpush.msra.mxu1 %v1128_v20 }
 0x657   :  { %1276 = vmatmul.msk.f32.vlgmr.msra.gmra.mxu1 %vm170_vm0, %v1132_v21 }
 0x65f   :  { %1277 = vmatmul.msk.f32.gmra.mxu1 %vm170_vm0, %v1133_v27 }
 0x667   :  { %1278 = vmatmul.msk.f32.gmra.mxu1 %vm170_vm0, %v1134_v30 }
 0x66f   :  { %1279 = vmatmul.msk.f32.gmra.mxu1 %vm170_vm0, %v1135_v34 }
 0x6d4   :  { %v1165_v22 = vpop.f32.mrf.mxu1 }
 0x6d5   :  { %1177 = vst [vmem:[#allocation11] sm:$0xff] %v1165_v22 }
 0x6dc   :  { %v1168_v63 = vpop.f32.mrf.mxu1 }
 0x6dd   :  { %1178 = vst [vmem:[#allocation11 + $0x8] sm:$0xff] %v1168_v63 }
 0x6de   :  { %1193 = dma.vmem_to_hbm [thread:$0]  %s1186_s12, 256, %s1188_s20, [#allocation4], %s1560_s21, %s1560_s21, %s1561_s22  }
 0x6e4   :  { %v1171_v23 = vpop.f32.mrf.mxu1 }
 0x6e5   :  { %1179 = vst [vmem:[#allocation12] sm:$0xff] %v1171_v23 }
 0x6ec   :  { %v1174_v4 = vpop.f32.mrf.mxu1 }
 0x6ed   :  { %1180 = vst [vmem:[#allocation12 + $0x8] sm:$0xff] %v1174_v4 }
 0x6ee   :  { %1206 = dma.vmem_to_hbm [thread:$0]  %s1199_s15, 256, %s1201_s5, [#allocation13], %s1560_s21, %s1560_s21, %s1561_s22  }
 0x6ef   :  { %1555 = dma.done.wait [#allocation4], 256  }
 0x6f0   :  { %1556 = vsyncadd [#allocation4], 4294967040 }
 0x6f1   :  { %1557 = dma.done.wait [#allocation13], 256  }
 0x6f2   :  { %1558 = vsyncadd [#allocation13], 4294967040 }
 0x6f3   :  { %1215 = vsyncpa [#allocation3], 1 }
 0x6f4   :  { %1216 = vsyncpa [#allocation6], 1 }
 0x6f5   :  { %1217 = vsyncpa [#allocation9], 1 }
 0x6f6   :  { %1218 = vsyncpa [#allocation4], 1 }
 0x6f7   :  { %1219 = vsyncpa [#allocation13], 1 }

</bundles_post_ra>
